<compile_context>
chip_gen: v7x
topology: tpu7x:2x2x1
jax: 0.10.0
libtpu: 0.0.40
codegen_flags: <defaults>
</compile_context>

<pallas_src>
import functools

import jax
import jax.numpy as jnp
from jax import lax
from jax.experimental import pallas as pl
from jax.experimental.pallas import tpu as pltpu

MATMUL_DTYPE = jnp.bfloat16        # MXU operand dtype (f32 accumulation); VPU/EUP math stays f32.


# ------------------------------ small helpers --------------------------------

def _cdiv(a, b):
    return -(-a // b)


def _round_up(x, m):
    return ((x + m - 1) // m) * m


def _f32(a):
    return a if a.dtype == jnp.float32 else a.astype(jnp.float32)


@functools.lru_cache(maxsize=None)
def _vmem_limit():
    # generation-dependent scoped-VMEM budget: 3/4 of physical (48 MiB on v7x, 96 MiB on v5e/v6e)
    try:
        cap = pltpu.get_tpu_info().vmem_capacity_bytes
        return int(min(cap * 3 // 4, 112 * 1024 * 1024))
    except Exception:
        return 48 * 1024 * 1024


def _row_tiles(M, tm):
    """Balanced row tiles (no 2x padded tail) and >=2 programs when M >= 16 (v7x has 2 TCs)."""
    n = max(_cdiv(M, tm), 2 if M >= 16 else 1)
    tm_eff = _round_up(_cdiv(M, n), 8)
    return tm_eff, tm_eff * n


def _pad_rows(a, Mp):
    M = a.shape[0]
    if Mp == M:
        return a
    return jnp.pad(a, ((0, Mp - M),) + ((0, 0),) * (a.ndim - 1))


_ACTS = {
    None: lambda x: x,
    "relu": lambda x: jnp.maximum(x, 0.0),
    "silu": lambda x: x * jax.nn.sigmoid(x),
    "softplus": jax.nn.softplus,
}


def _shift_down(v, k, fill, row_iota):
    """rows t>=k get v[t-k]; rows t<k get `fill`.  Sublane shift done on the XLU via roll."""
    return jnp.where(row_iota >= k, pltpu.roll(v, k, 0), fill)


# ------------------- fused linear kernels (bias / act epilogues) -------------

@functools.lru_cache(maxsize=None)
def _make_linear_kernel(act, softplus_cols, tn):
    act_fn = _ACTS[act]

    def kernel(x_ref, w_ref, b_ref, o_ref):
        y = jnp.dot(x_ref[...].astype(MATMUL_DTYPE), w_ref[...].astype(MATMUL_DTYPE),
                    preferred_element_type=jnp.float32)
        y = y + b_ref[...]
        if softplus_cols:                                  # softplus only on the delta columns
            col = lax.broadcasted_iota(jnp.int32, y.shape, 1) + pl.program_id(1) * tn
            y = jnp.where(col < softplus_cols, jax.nn.softplus(y), y)
        o_ref[...] = act_fn(y)

    return kernel


def pallas_linear(x, w_t, bias=None, act=None, softplus_cols=0, tm=512, tn=256):
    """y = act(x @ w_t + bias); optional softplus on the first `softplus_cols` columns.
    x: (M, K); w_t: (K, N) pre-transposed bf16.  Rows tiled 'parallel'; N tiled when large."""
    M, K = x.shape
    N = w_t.shape[1]
    if bias is None:
        bias = jnp.zeros((N,), jnp.float32)
    tm_eff, Mp = _row_tiles(M, tm)
    tn_eff = tn if (N > tn and N % tn == 0) else N
    xp = _pad_rows(_f32(x), Mp)
    out = pl.pallas_call(
        _make_linear_kernel(act, int(softplus_cols), tn_eff),
        out_shape=jax.ShapeDtypeStruct((Mp, N), jnp.float32),
        grid=(Mp // tm_eff, N // tn_eff),
        in_specs=[
            pl.BlockSpec((tm_eff, K), lambda i, j: (i, 0)),
            pl.BlockSpec((K, tn_eff), lambda i, j: (0, j)),
            pl.BlockSpec((1, tn_eff), lambda i, j: (0, j)),
        ],
        out_specs=pl.BlockSpec((tm_eff, tn_eff), lambda i, j: (i, j)),
        compiler_params=pltpu.CompilerParams(
            dimension_semantics=("parallel", "parallel"), vmem_limit_bytes=_vmem_limit()),
    )(xp, w_t, _f32(bias).reshape(1, N))
    return out[:M] if Mp != M else out


def _rmsnorm_linear_kernel(x_ref, g_ref, w_ref, o_ref):
    x = x_ref[...]
    ms = jnp.mean(x * x, axis=-1, keepdims=True)
    xn = (x * lax.rsqrt(ms + 1e-5) * g_ref[...]).astype(MATMUL_DTYPE)
    o_ref[...] = jnp.dot(xn, w_ref[...].astype(MATMUL_DTYPE),
                         preferred_element_type=jnp.float32)


def pallas_rmsnorm_linear(x, gamma, w_t, tm=512, tn=256):
    """Fused RMSNorm(x) @ w_t  (Mamba pre-norm + in_proj, no bias)."""
    M, K = x.shape
    N = w_t.shape[1]
    tm_eff, Mp = _row_tiles(M, tm)
    tn_eff = tn if (N > tn and N % tn == 0) else N
    xp = _pad_rows(_f32(x), Mp)
    out = pl.pallas_call(
        _rmsnorm_linear_kernel,
        out_shape=jax.ShapeDtypeStruct((Mp, N), jnp.float32),
        grid=(Mp // tm_eff, N // tn_eff),
        in_specs=[
            pl.BlockSpec((tm_eff, K), lambda i, j: (i, 0)),
            pl.BlockSpec((1, K), lambda i, j: (0, 0)),
            pl.BlockSpec((K, tn_eff), lambda i, j: (0, j)),
        ],
        out_specs=pl.BlockSpec((tm_eff, tn_eff), lambda i, j: (i, j)),
        compiler_params=pltpu.CompilerParams(
            dimension_semantics=("parallel", "parallel"), vmem_limit_bytes=_vmem_limit()),
    )(xp, _f32(gamma).reshape(1, K), w_t)
    return out[:M] if Mp != M else out


def _gated_linear_kernel(y_ref, z_ref, w_ref, r_ref, o_ref):
    z = z_ref[...]
    g = (y_ref[...] * (z * jax.nn.sigmoid(z))).astype(MATMUL_DTYPE)
    o_ref[...] = jnp.dot(g, w_ref[...].astype(MATMUL_DTYPE),
                         preferred_element_type=jnp.float32) + r_ref[...]


def pallas_gated_linear(y, z, w_t, residual, tm=512, tn=256):
    """out = (y * silu(z)) @ w_t + residual  — fused SSM gate + out_proj + residual add."""
    M, K = y.shape
    N = w_t.shape[1]
    tm_eff, Mp = _row_tiles(M, tm)
    tn_eff = tn if (N > tn and N % tn == 0) else N
    yp, zp, rp = (_pad_rows(_f32(a), Mp) for a in (y, z, residual))
    out = pl.pallas_call(
        _gated_linear_kernel,
        out_shape=jax.ShapeDtypeStruct((Mp, N), jnp.float32),
        grid=(Mp // tm_eff, N // tn_eff),
        in_specs=[
            pl.BlockSpec((tm_eff, K), lambda i, j: (i, 0)),
            pl.BlockSpec((tm_eff, K), lambda i, j: (i, 0)),
            pl.BlockSpec((K, tn_eff), lambda i, j: (0, j)),
            pl.BlockSpec((tm_eff, tn_eff), lambda i, j: (i, j)),
        ],
        out_specs=pl.BlockSpec((tm_eff, tn_eff), lambda i, j: (i, j)),
        compiler_params=pltpu.CompilerParams(
            dimension_semantics=("parallel", "parallel"), vmem_limit_bytes=_vmem_limit()),
    )(yp, zp, w_t, rp)
    return out[:M] if Mp != M else out


# ------------------- depthwise causal conv1d + SiLU (fused) ------------------

@functools.lru_cache(maxsize=None)
def _make_dwconv_silu_kernel(K):
    def kernel(x_ref, w_ref, b_ref, o_ref):
        xb = x_ref[0]                                        # (Lp, td) loaded once
        w = w_ref[...]                                       # (K, td)
        row = lax.broadcasted_iota(jnp.int32, xb.shape, 0)
        acc = xb * w[K - 1:K, :]                             # tap aligned with the current step
        for j in range(1, K):                                # causal taps via sublane roll + mask
            acc = acc + _shift_down(xb, j, 0.0, row) * w[K - 1 - j:K - j, :]
        y = acc + b_ref[...]
        o_ref[0] = y * jax.nn.sigmoid(y)                     # fused SiLU

    return kernel


def pallas_dwconv_silu(x, w, bias):
    """Causal per-channel conv1d along L (+SiLU), kept in (B, L, d_inner) layout.  The causal
    left pad is realized in-kernel by masked rolls (no HBM pre-pad).  x: (B, L, Din); w: (Din, K)."""
    Bsz, L, Din = x.shape
    K = w.shape[1]
    td = 128 if Din % 128 == 0 else Din
    nd = Din // td
    Lp = _round_up(L, 8)
    xin = _f32(x)
    if Lp != L:
        xin = jnp.pad(xin, ((0, 0), (0, Lp - L), (0, 0)))    # trailing pad only, sliced off
    out = pl.pallas_call(
        _make_dwconv_silu_kernel(K),
        out_shape=jax.ShapeDtypeStruct((Bsz, Lp, Din), jnp.float32),
        grid=(Bsz, nd),
        in_specs=[
            pl.BlockSpec((1, Lp, td), lambda bi, di: (bi, 0, di)),
            pl.BlockSpec((K, td), lambda bi, di: (0, di)),
            pl.BlockSpec((1, td), lambda bi, di: (0, di)),
        ],
        out_specs=pl.BlockSpec((1, Lp, td), lambda bi, di: (bi, 0, di)),
        compiler_params=pltpu.CompilerParams(
            dimension_semantics=("parallel", "parallel"), vmem_limit_bytes=_vmem_limit()),
    )(xin, _f32(w).T, _f32(bias).reshape(1, Din))
    return out[:, :L] if Lp != L else out


# ---------------------------- selective scan (SSM) ----------------------------

@functools.lru_cache(maxsize=None)
def _make_scan_kernel(Tc, n_sub, S):
    def kernel(x_ref, dt_ref, At_ref, B_ref, C_ref, D_ref, y_ref, h_ref):
        # reset the carried state at the start of each (batch, channel-tile) time sweep
        @pl.when(pl.program_id(2) == 0)
        def _():
            h_ref[...] = jnp.zeros_like(h_ref)

        At = At_ref[...]                                   # (S, td)  A = -exp(A_log), transposed
        Dv = D_ref[...]                                    # (1, td)
        td = At.shape[1]
        row = lax.broadcasted_iota(jnp.int32, (Tc, td), 0)

        hs = [h_ref[s] for s in range(S)]                  # (1, td) carried states
        for c in range(n_sub):                             # static -> unrolled (LLO-visible)
            t0 = c * Tc
            xc = x_ref[0, t0:t0 + Tc, :]                   # (Tc, td)
            dtc = dt_ref[0, t0:t0 + Tc, :]                 # (Tc, td)
            Bc = B_ref[0, t0:t0 + Tc, :]                   # (Tc, S)  broadcast along d_inner here
            Cc = C_ref[0, t0:t0 + Tc, :]                   # (Tc, S)
            dtx = dtc * xc
            y = Dv * xc
            for s in range(S):                             # d_state is tiny: unrolled
                a = jnp.exp(dtc * At[s:s + 1, :])          # chunk-batched exp on the EUP
                b = Bc[:, s:s + 1] * dtx                   # (Tc, td)
                k = 1
                while k < Tc:                              # log2(Tc) doubling steps, full vregs
                    b = a * _shift_down(b, k, 0.0, row) + b
                    a = a * _shift_down(a, k, 1.0, row)
                    k *= 2
                traj = a * hs[s] + b                       # apply carry with one broadcast FMA
                y = y + Cc[:, s:s + 1] * traj
                hs[s] = traj[Tc - 1:Tc, :]
            y_ref[0, t0:t0 + Tc, :] = y                    # one dense (Tc, td) store per chunk
        for s in range(S):                                 # write the carry back to scratch
            h_ref[s] = hs[s]

    return kernel


def pallas_selective_scan(x, delta, A_t, Bm, Cm, D, chunk=8, max_time_tile=128):
    """h_t = exp(dt*A)*h_{t-1} + B_t*(dt*x_t);  y_t = <C_t, h_t> + D*x_t   (f32 throughout).
    x, delta: (B, L, Din); A_t: (S, Din); Bm, Cm: (B, L, S); D: (Din,).
    Grid = (batch, d_inner tile, time tile['arbitrary']); state carried in VMEM scratch."""
    Bsz, L, Din = x.shape
    S = A_t.shape[0]
    Tc = chunk
    Lc = _round_up(L, Tc)
    Tl = Lc if Lc <= max_time_tile else max_time_tile
    Lp = _round_up(L, Tl)
    td = 128 if Din % 128 == 0 else Din
    nd = Din // td
    n_t = Lp // Tl
    x_f, dt_f, b_f, c_f = _f32(x), _f32(delta), _f32(Bm), _f32(Cm)
    if Lp != L:
        # TODO(synk): absorb this tail padding into masked in-kernel loads instead of jnp.pad.
        pad = ((0, 0), (0, Lp - L), (0, 0))
        x_f, dt_f = jnp.pad(x_f, pad), jnp.pad(dt_f, pad)  # dt=0 on pads -> state unchanged
        b_f, c_f = jnp.pad(b_f, pad), jnp.pad(c_f, pad)
    # TODO(synk): consider pipeline_mode=pl.Buffered(3) on the small B/C blocks on v5e/v6e.
    out = pl.pallas_call(
        _make_scan_kernel(Tc, Tl // Tc, S),
        out_shape=jax.ShapeDtypeStruct((Bsz, Lp, Din), jnp.float32),
        grid=(Bsz, nd, n_t),
        in_specs=[
            pl.BlockSpec((1, Tl, td), lambda bi, di, ti: (bi, ti, di)),
            pl.BlockSpec((1, Tl, td), lambda bi, di, ti: (bi, ti, di)),
            pl.BlockSpec((S, td), lambda bi, di, ti: (0, di)),
            pl.BlockSpec((1, Tl, S), lambda bi, di, ti: (bi, ti, 0)),
            pl.BlockSpec((1, Tl, S), lambda bi, di, ti: (bi, ti, 0)),
            pl.BlockSpec((1, td), lambda bi, di, ti: (0, di)),
        ],
        out_specs=pl.BlockSpec((1, Tl, td), lambda bi, di, ti: (bi, ti, di)),
        scratch_shapes=[pltpu.VMEM((S, 1, td), jnp.float32)],
        compiler_params=pltpu.CompilerParams(
            dimension_semantics=("parallel", "parallel", "arbitrary"),
            vmem_limit_bytes=_vmem_limit()),
    )(x_f, dt_f, _f32(A_t), b_f, c_f, _f32(D).reshape(1, Din))
    return out[:, :L] if Lp != L else out


# ------------------------------ CNN front-end ---------------------------------

@functools.lru_cache(maxsize=None)
def _make_conv2d_kernel(Cin, Cout, ksize, H, W, act, has_residual):
    act_fn = _ACTS[act]

    def kernel(*refs):
        if has_residual:
            x_ref, w_ref, b_ref, r_ref, o_ref = refs
        else:
            x_ref, w_ref, b_ref, o_ref = refs
        for co in range(Cout):
            acc = jnp.zeros((H, W), jnp.float32)
            for ci in range(Cin):
                for kh in range(ksize):
                    for kw in range(ksize):
                        wv = w_ref[((co * Cin + ci) * ksize + kh) * ksize + kw]  # SMEM scalar
                        acc = acc + wv * x_ref[0, ci, kh:kh + H, kw:kw + W]      # shifted tap
            acc = acc + b_ref[co]
            if has_residual:
                acc = acc + r_ref[0, co]
            o_ref[0, co] = act_fn(acc)

    return kernel


def pallas_conv2d(x, w, b, ksize, act=None, residual=None):
    """NCHW 'same' conv (stride 1) with bias, optional residual add and activation fused.
    Shift-and-accumulate over taps per batch program — no im2col materialization and no layout
    transposes.  Channels stay in tiny unrolled loops (Cin, Cout <= 4 here; channels-on-lanes
    would waste 124/128 lanes).  x: (B, Cin, H, W); w: (Cout, Cin, k, k)."""
    Bsz, Cin, H, W = x.shape
    Cout = w.shape[0]
    p = ksize // 2
    xin = _f32(x)
    if p:
        xin = jnp.pad(xin, ((0, 0), (0, 0), (p, p), (p, p)))
    Hp, Wp = H + 2 * p, W + 2 * p
    args = [xin, _f32(w).reshape(-1), _f32(b)]
    in_specs = [
        pl.BlockSpec((1, Cin, Hp, Wp), lambda bi: (bi, 0, 0, 0)),
        pl.BlockSpec(memory_space=pltpu.MemorySpace.SMEM),
        pl.BlockSpec(memory_space=pltpu.MemorySpace.SMEM),
    ]
    if residual is not None:
        args.append(_f32(residual))
        in_specs.append(pl.BlockSpec((1, Cout, H, W), lambda bi: (bi, 0, 0, 0)))
    return pl.pallas_call(
        _make_conv2d_kernel(Cin, Cout, ksize, H, W, act, residual is not None),
        out_shape=jax.ShapeDtypeStruct((Bsz, Cout, H, W), jnp.float32),
        grid=(Bsz,),
        in_specs=in_specs,
        out_specs=pl.BlockSpec((1, Cout, H, W), lambda bi: (bi, 0, 0, 0)),
        compiler_params=pltpu.CompilerParams(
            dimension_semantics=("parallel",), vmem_limit_bytes=_vmem_limit()),
    )(*args)


def residual_block(x, p, act):
    h = pallas_conv2d(x, p['w1'], p['b1'], p['k'], act=act)
    skip = pallas_conv2d(x, p['ws'], p['bs'], 1) if 'ws' in p else x
    return pallas_conv2d(h, p['w2'], p['b2'], p['k'], act=act, residual=skip)


def maxpool_2x1(x):
    Bsz, C, H, W = x.shape
    return x.reshape(Bsz, C, H // 2, 2, W).max(axis=3)


# ----------------------------------- Mamba ------------------------------------

def mamba_block(x, p, dims):
    Bsz, L, Dm = x.shape
    d_inner, d_state = dims['d_inner'], dims['d_state']
    x2 = x.reshape(Bsz * L, Dm)

    # fused pre-RMSNorm + in_proj (no bias)
    xz = pallas_rmsnorm_linear(x2, p['norm_w'], p['in_proj_t']).reshape(Bsz, L, 2 * d_inner)
    xi, z = xz[..., :d_inner], xz[..., d_inner:]

    # fused causal depthwise conv1d + SiLU (stays in (B, L, d_inner) layout)
    xc = pallas_dwconv_silu(xi, p['conv_w'], p['conv_b'])

    # fused x_proj + dt_proj (bias + softplus on the delta columns), lane-padded output
    dbc = pallas_linear(xc.reshape(Bsz * L, d_inner), p['xdt_proj_t'], p['xdt_proj_b'],
                        softplus_cols=d_inner)
    delta = dbc[:, :d_inner].reshape(Bsz, L, d_inner)
    Bm = dbc[:, d_inner:d_inner + d_state].reshape(Bsz, L, d_state)
    Cm = dbc[:, d_inner + d_state:d_inner + 2 * d_state].reshape(Bsz, L, d_state)

    y = pallas_selective_scan(xc, delta, p['A_neg_t'], Bm, Cm, p['D'])

    # fused gate (y * silu(z)) + out_proj (no bias) + pre-norm residual add
    out = pallas_gated_linear(y.reshape(Bsz * L, d_inner), z.reshape(Bsz * L, d_inner),
                              p['out_proj_t'], x2)
    return out.reshape(Bsz, L, Dm)


def mamba(x, layers, dims):
    for p in layers:
        x = mamba_block(x, p, dims)
    return x


# ----------------------------- CNNMamba forward --------------------------------

def cnn_mamba_forward(x, params, *, flux=1, act='relu'):
    # x: (B, n_mels, T)
    if flux:
        diff = x[..., 1:] - x[..., :-1]
        diff = jax.nn.relu(jnp.pad(diff, ((0, 0), (0, 0), (1, 0))))
        x = jnp.concatenate([x, diff], axis=1)            # torch.hstack == cat on dim 1
    x = x[:, None, :, :]                                  # (B, 1, n_dims, T)  NCHW
    x = residual_block(x, params['conv1'], act)
    x = maxpool_2x1(x)
    # dropout1: inference identity
    x = residual_block(x, params['conv2'], act)
    x = maxpool_2x1(x)
    # dropout2: inference identity
    Bsz, _, _, W = x.shape
    x = x.reshape(Bsz, -1, W).transpose(0, 2, 1)          # (B, T, d_model)
    x = mamba(x, params['mamba_layers'], params['dims'])
    L, Dm = x.shape[1], x.shape[2]
    y = pallas_linear(x.reshape(Bsz * L, Dm), params['fc1_t'], params['fc1_b'], act=act)
    y = y[:, :params['n_classes']]                        # drop the lane padding
    return y.reshape(Bsz, L, -1).transpose(0, 2, 1)       # (B, n_classes, T)


# ----------------------------- parameter init ----------------------------------

def init_params(key, *, n_mels=16, n_classes=6, d_state=4, d_conv=4, expand=2,
                flux=1, num_channels=4, n_layers=1):
    n_dims = n_mels * (1 + flux)
    d_model = num_channels * (n_dims // 4)
    d_inner = expand * d_model
    dt_rank = -(-d_model // 16)

    keys = iter(jax.random.split(key, 64))

    def nrm(shape, scale=0.05):
        return (scale * jax.random.normal(next(keys), shape)).astype(jnp.float32)

    params = {'n_classes': n_classes}
    params['conv1'] = dict(
        k=3,
        w1=nrm((num_channels, 1, 3, 3)), b1=nrm((num_channels,)),
        w2=nrm((num_channels, num_channels, 3, 3)), b2=nrm((num_channels,)),
        ws=nrm((num_channels, 1, 1, 1)), bs=nrm((num_channels,)))
    params['conv2'] = dict(
        k=3,
        w1=nrm((num_channels, num_channels, 3, 3)), b1=nrm((num_channels,)),
        w2=nrm((num_channels, num_channels, 3, 3)), b2=nrm((num_channels,)))

    n_bc = 2 * d_state
    n_xdt = _round_up(d_inner + n_bc, 128)               # lane-dense [delta | B | C] output
    layers = []
    for _ in range(n_layers):
        A_log = jnp.log(jnp.broadcast_to(
            jnp.arange(1, d_state + 1, dtype=jnp.float32), (d_inner, d_state)))
        x_proj_w = nrm((dt_rank + n_bc, d_inner))         # torch Linear layout (out, in)
        dt_proj_w = nrm((d_inner, dt_rank))
        dt_proj_b = nrm((d_inner,))
        x_proj_t = x_proj_w.T                             # (d_inner, dt_rank + 2S)
        w_delta = x_proj_t[:, :dt_rank] @ dt_proj_w.T     # fused x_proj[:, :dt_rank] @ dt_proj
        w_xdt = jnp.concatenate([w_delta, x_proj_t[:, dt_rank:]], axis=1)
        w_xdt = jnp.pad(w_xdt, ((0, 0), (0, n_xdt - w_xdt.shape[1])))
        b_xdt = jnp.pad(dt_proj_b, (0, n_xdt - d_inner))
        layers.append(dict(
            norm_w=jnp.ones((d_model,), jnp.float32),
            in_proj_t=nrm((2 * d_inner, d_model)).T.astype(MATMUL_DTYPE),
            conv_w=nrm((d_inner, d_conv)),
            conv_b=nrm((d_inner,)),
            xdt_proj_t=w_xdt.astype(MATMUL_DTYPE),
            xdt_proj_b=b_xdt.astype(jnp.float32),
            A_neg_t=(-jnp.exp(A_log)).T.astype(jnp.float32),   # (S, d_inner)
            D=jnp.ones((d_inner,), jnp.float32),
            out_proj_t=nrm((d_model, d_inner)).T.astype(MATMUL_DTYPE),
        ))
    params['mamba_layers'] = layers

    n_fc = _round_up(n_classes, 128)                      # lane-dense fc1 output
    fc1_w, fc1_b = nrm((n_classes, d_model)), nrm((n_classes,))
    params['fc1_t'] = jnp.pad(fc1_w.T, ((0, 0), (0, n_fc - n_classes))).astype(MATMUL_DTYPE)
    params['fc1_b'] = jnp.pad(fc1_b, (0, n_fc - n_classes)).astype(jnp.float32)
    params['dims'] = dict(d_model=d_model, d_inner=d_inner, d_state=d_state, dt_rank=dt_rank)
    return params


# ----------------------------------- main ---------------------------------------

if __name__ == "__main__":
    key = jax.random.PRNGKey(0)
    kx, kp = jax.random.split(key)

    B, n_mels, T, n_classes = 2, 16, 8, 6
    x = jax.random.normal(kx, (B, n_mels, T), dtype=jnp.float32)
    params = init_params(kp, n_mels=n_mels, n_classes=n_classes,
                         d_state=4, d_conv=4, expand=2, flux=1,
                         num_channels=4, n_layers=1)

    out = cnn_mamba_forward(x, params, flux=1, act='relu')
    out = jax.block_until_ready(out)
    assert out.shape == (B, n_classes, T), out.shape
    assert bool(jnp.all(jnp.isfinite(out)))
    print("KERNEL_OK")
</pallas_src>

<mosaic_0001>
module attributes {stable_mosaic.version = 11 : i64} {
  func.func @kernel(%arg0: i32, %arg1: memref<1x1x34x10xf32, #tpu.memory_space<vmem>>, %arg2: memref<36xf32, #tpu.memory_space<smem>>, %arg3: memref<4xf32, #tpu.memory_space<smem>>, %arg4: memref<1x4x32x8xf32, #tpu.memory_space<vmem>>) attributes {dimension_semantics = [#tpu.dimension_semantics<parallel>], iteration_bounds = array<i64: 2>, scalar_prefetch = 0 : i64, scratch_operands = 0 : i64, tpu.core_type = #tpu.core_type<tc>, window_params = [{transform_indices = @transform_0, window_bounds = array<i64: 1, 1, 34, 10>}, {transform_indices = @transform_1, window_bounds = array<i64: 36>}, {transform_indices = @transform_2, window_bounds = array<i64: 4>}, {transform_indices = @transform_3, window_bounds = array<i64: 1, 4, 32, 8>}]} {
    %cst = arith.constant 0.000000e+00 : f32
    %0 = vector.broadcast %cst : f32 to vector<32x8xf32>
    %c0 = arith.constant 0 : index
    %1 = memref.load %arg2[%c0] : memref<36xf32, #tpu.memory_space<smem>>
    %c0_0 = arith.constant 0 : index
    %c0_1 = arith.constant 0 : index
    %c0_2 = arith.constant 0 : index
    %c0_3 = arith.constant 0 : index
    %2 = vector.load %arg1[%c0_0, %c0_1, %c0_2, %c0_3] : memref<1x1x34x10xf32, #tpu.memory_space<vmem>>, vector<1x1x32x8xf32>
    %3 = vector.shape_cast %2 : vector<1x1x32x8xf32> to vector<32x8xf32>
    %4 = vector.broadcast %1 : f32 to vector<32x8xf32>
    %5 = arith.mulf %4, %3 : vector<32x8xf32>
    %6 = arith.addf %0, %5 : vector<32x8xf32>
    %c1 = arith.constant 1 : index
    %7 = memref.load %arg2[%c1] : memref<36xf32, #tpu.memory_space<smem>>
    %c0_4 = arith.constant 0 : index
    %c0_5 = arith.constant 0 : index
    %c0_6 = arith.constant 0 : index
    %c1_7 = arith.constant 1 : index
    %8 = vector.load %arg1[%c0_4, %c0_5, %c0_6, %c1_7] : memref<1x1x34x10xf32, #tpu.memory_space<vmem>>, vector<1x1x32x8xf32>
    %9 = vector.shape_cast %8 : vector<1x1x32x8xf32> to vector<32x8xf32>
    %10 = vector.broadcast %7 : f32 to vector<32x8xf32>
    %11 = arith.mulf %10, %9 : vector<32x8xf32>
    %12 = arith.addf %6, %11 : vector<32x8xf32>
    %c2 = arith.constant 2 : index
    %13 = memref.load %arg2[%c2] : memref<36xf32, #tpu.memory_space<smem>>
    %c0_8 = arith.constant 0 : index
    %c0_9 = arith.constant 0 : index
    %c0_10 = arith.constant 0 : index
    %c2_11 = arith.constant 2 : index
    %14 = vector.load %arg1[%c0_8, %c0_9, %c0_10, %c2_11] : memref<1x1x34x10xf32, #tpu.memory_space<vmem>>, vector<1x1x32x8xf32>
    %15 = vector.shape_cast %14 : vector<1x1x32x8xf32> to vector<32x8xf32>
    %16 = vector.broadcast %13 : f32 to vector<32x8xf32>
    %17 = arith.mulf %16, %15 : vector<32x8xf32>
    %18 = arith.addf %12, %17 : vector<32x8xf32>
    %c3 = arith.constant 3 : index
    %19 = memref.load %arg2[%c3] : memref<36xf32, #tpu.memory_space<smem>>
    %c0_12 = arith.constant 0 : index
    %c0_13 = arith.constant 0 : index
    %c1_14 = arith.constant 1 : index
    %c0_15 = arith.constant 0 : index
    %20 = vector.load %arg1[%c0_12, %c0_13, %c1_14, %c0_15] : memref<1x1x34x10xf32, #tpu.memory_space<vmem>>, vector<1x1x32x8xf32>
    %21 = vector.shape_cast %20 : vector<1x1x32x8xf32> to vector<32x8xf32>
    %22 = vector.broadcast %19 : f32 to vector<32x8xf32>
    %23 = arith.mulf %22, %21 : vector<32x8xf32>
    %24 = arith.addf %18, %23 : vector<32x8xf32>
    %c4 = arith.constant 4 : index
    %25 = memref.load %arg2[%c4] : memref<36xf32, #tpu.memory_space<smem>>
    %c0_16 = arith.constant 0 : index
    %c0_17 = arith.constant 0 : index
    %c1_18 = arith.constant 1 : index
    %c1_19 = arith.constant 1 : index
    %26 = vector.load %arg1[%c0_16, %c0_17, %c1_18, %c1_19] : memref<1x1x34x10xf32, #tpu.memory_space<vmem>>, vector<1x1x32x8xf32>
    %27 = vector.shape_cast %26 : vector<1x1x32x8xf32> to vector<32x8xf32>
    %28 = vector.broadcast %25 : f32 to vector<32x8xf32>
    %29 = arith.mulf %28, %27 : vector<32x8xf32>
    %30 = arith.addf %24, %29 : vector<32x8xf32>
    %c5 = arith.constant 5 : index
    %31 = memref.load %arg2[%c5] : memref<36xf32, #tpu.memory_space<smem>>
    %c0_20 = arith.constant 0 : index
    %c0_21 = arith.constant 0 : index
    %c1_22 = arith.constant 1 : index
    %c2_23 = arith.constant 2 : index
    %32 = vector.load %arg1[%c0_20, %c0_21, %c1_22, %c2_23] : memref<1x1x34x10xf32, #tpu.memory_space<vmem>>, vector<1x1x32x8xf32>
    %33 = vector.shape_cast %32 : vector<1x1x32x8xf32> to vector<32x8xf32>
    %34 = vector.broadcast %31 : f32 to vector<32x8xf32>
    %35 = arith.mulf %34, %33 : vector<32x8xf32>
    %36 = arith.addf %30, %35 : vector<32x8xf32>
    %c6 = arith.constant 6 : index
    %37 = memref.load %arg2[%c6] : memref<36xf32, #tpu.memory_space<smem>>
    %c0_24 = arith.constant 0 : index
    %c0_25 = arith.constant 0 : index
    %c2_26 = arith.constant 2 : index
    %c0_27 = arith.constant 0 : index
    %38 = vector.load %arg1[%c0_24, %c0_25, %c2_26, %c0_27] : memref<1x1x34x10xf32, #tpu.memory_space<vmem>>, vector<1x1x32x8xf32>
    %39 = vector.shape_cast %38 : vector<1x1x32x8xf32> to vector<32x8xf32>
    %40 = vector.broadcast %37 : f32 to vector<32x8xf32>
    %41 = arith.mulf %40, %39 : vector<32x8xf32>
    %42 = arith.addf %36, %41 : vector<32x8xf32>
    %c7 = arith.constant 7 : index
    %43 = memref.load %arg2[%c7] : memref<36xf32, #tpu.memory_space<smem>>
    %c0_28 = arith.constant 0 : index
    %c0_29 = arith.constant 0 : index
    %c2_30 = arith.constant 2 : index
    %c1_31 = arith.constant 1 : index
    %44 = vector.load %arg1[%c0_28, %c0_29, %c2_30, %c1_31] : memref<1x1x34x10xf32, #tpu.memory_space<vmem>>, vector<1x1x32x8xf32>
    %45 = vector.shape_cast %44 : vector<1x1x32x8xf32> to vector<32x8xf32>
    %46 = vector.broadcast %43 : f32 to vector<32x8xf32>
    %47 = arith.mulf %46, %45 : vector<32x8xf32>
    %48 = arith.addf %42, %47 : vector<32x8xf32>
    %c8 = arith.constant 8 : index
    %49 = memref.load %arg2[%c8] : memref<36xf32, #tpu.memory_space<smem>>
    %c0_32 = arith.constant 0 : index
    %c0_33 = arith.constant 0 : index
    %c2_34 = arith.constant 2 : index
    %c2_35 = arith.constant 2 : index
    %50 = vector.load %arg1[%c0_32, %c0_33, %c2_34, %c2_35] : memref<1x1x34x10xf32, #tpu.memory_space<vmem>>, vector<1x1x32x8xf32>
    %51 = vector.shape_cast %50 : vector<1x1x32x8xf32> to vector<32x8xf32>
    %52 = vector.broadcast %49 : f32 to vector<32x8xf32>
    %53 = arith.mulf %52, %51 : vector<32x8xf32>
    %54 = arith.addf %48, %53 : vector<32x8xf32>
    %c0_36 = arith.constant 0 : index
    %55 = memref.load %arg3[%c0_36] : memref<4xf32, #tpu.memory_space<smem>>
    %56 = vector.broadcast %55 : f32 to vector<32x8xf32>
    %57 = arith.addf %54, %56 : vector<32x8xf32>
    %cst_37 = arith.constant 0.000000e+00 : f32
    %58 = vector.broadcast %cst_37 : f32 to vector<32x8xf32>
    %59 = arith.maximumf %57, %58 : vector<32x8xf32>
    %c0_38 = arith.constant 0 : index
    %c0_39 = arith.constant 0 : index
    %c0_40 = arith.constant 0 : index
    %c0_41 = arith.constant 0 : index
    %60 = vector.load %arg4[%c0_38, %c0_39, %c0_40, %c0_41] : memref<1x4x32x8xf32, #tpu.memory_space<vmem>>, vector<1x1x32x8xf32>
    %61 = vector.shape_cast %60 : vector<1x1x32x8xf32> to vector<32x8xf32>
    %62 = vector.shape_cast %59 : vector<32x8xf32> to vector<1x1x32x8xf32>
    tpu.vector_store %arg4[%c0_38, %c0_39, %c0_40, %c0_41], %62 {strides = array<i32>} : memref<1x4x32x8xf32, #tpu.memory_space<vmem>>, vector<1x1x32x8xf32>,
    %cst_42 = arith.constant 0.000000e+00 : f32
    %63 = vector.broadcast %cst_42 : f32 to vector<32x8xf32>
    %c9 = arith.constant 9 : index
    %64 = memref.load %arg2[%c9] : memref<36xf32, #tpu.memory_space<smem>>
    %c0_43 = arith.constant 0 : index
    %c0_44 = arith.constant 0 : index
    %c0_45 = arith.constant 0 : index
    %c0_46 = arith.constant 0 : index
    %65 = vector.load %arg1[%c0_43, %c0_44, %c0_45, %c0_46] : memref<1x1x34x10xf32, #tpu.memory_space<vmem>>, vector<1x1x32x8xf32>
    %66 = vector.shape_cast %65 : vector<1x1x32x8xf32> to vector<32x8xf32>
    %67 = vector.broadcast %64 : f32 to vector<32x8xf32>
    %68 = arith.mulf %67, %66 : vector<32x8xf32>
    %69 = arith.addf %63, %68 : vector<32x8xf32>
    %c10 = arith.constant 10 : index
    %70 = memref.load %arg2[%c10] : memref<36xf32, #tpu.memory_space<smem>>
    %c0_47 = arith.constant 0 : index
    %c0_48 = arith.constant 0 : index
    %c0_49 = arith.constant 0 : index
    %c1_50 = arith.constant 1 : index
    %71 = vector.load %arg1[%c0_47, %c0_48, %c0_49, %c1_50] : memref<1x1x34x10xf32, #tpu.memory_space<vmem>>, vector<1x1x32x8xf32>
    %72 = vector.shape_cast %71 : vector<1x1x32x8xf32> to vector<32x8xf32>
    %73 = vector.broadcast %70 : f32 to vector<32x8xf32>
    %74 = arith.mulf %73, %72 : vector<32x8xf32>
    %75 = arith.addf %69, %74 : vector<32x8xf32>
    %c11 = arith.constant 11 : index
    %76 = memref.load %arg2[%c11] : memref<36xf32, #tpu.memory_space<smem>>
    %c0_51 = arith.constant 0 : index
    %c0_52 = arith.constant 0 : index
    %c0_53 = arith.constant 0 : index
    %c2_54 = arith.constant 2 : index
    %77 = vector.load %arg1[%c0_51, %c0_52, %c0_53, %c2_54] : memref<1x1x34x10xf32, #tpu.memory_space<vmem>>, vector<1x1x32x8xf32>
    %78 = vector.shape_cast %77 : vector<1x1x32x8xf32> to vector<32x8xf32>
    %79 = vector.broadcast %76 : f32 to vector<32x8xf32>
    %80 = arith.mulf %79, %78 : vector<32x8xf32>
    %81 = arith.addf %75, %80 : vector<32x8xf32>
    %c12 = arith.constant 12 : index
    %82 = memref.load %arg2[%c12] : memref<36xf32, #tpu.memory_space<smem>>
    %c0_55 = arith.constant 0 : index
    %c0_56 = arith.constant 0 : index
    %c1_57 = arith.constant 1 : index
    %c0_58 = arith.constant 0 : index
    %83 = vector.load %arg1[%c0_55, %c0_56, %c1_57, %c0_58] : memref<1x1x34x10xf32, #tpu.memory_space<vmem>>, vector<1x1x32x8xf32>
    %84 = vector.shape_cast %83 : vector<1x1x32x8xf32> to vector<32x8xf32>
    %85 = vector.broadcast %82 : f32 to vector<32x8xf32>
    %86 = arith.mulf %85, %84 : vector<32x8xf32>
    %87 = arith.addf %81, %86 : vector<32x8xf32>
    %c13 = arith.constant 13 : index
    %88 = memref.load %arg2[%c13] : memref<36xf32, #tpu.memory_space<smem>>
    %c0_59 = arith.constant 0 : index
    %c0_60 = arith.constant 0 : index
    %c1_61 = arith.constant 1 : index
    %c1_62 = arith.constant 1 : index
    %89 = vector.load %arg1[%c0_59, %c0_60, %c1_61, %c1_62] : memref<1x1x34x10xf32, #tpu.memory_space<vmem>>, vector<1x1x32x8xf32>
    %90 = vector.shape_cast %89 : vector<1x1x32x8xf32> to vector<32x8xf32>
    %91 = vector.broadcast %88 : f32 to vector<32x8xf32>
    %92 = arith.mulf %91, %90 : vector<32x8xf32>
    %93 = arith.addf %87, %92 : vector<32x8xf32>
    %c14 = arith.constant 14 : index
    %94 = memref.load %arg2[%c14] : memref<36xf32, #tpu.memory_space<smem>>
    %c0_63 = arith.constant 0 : index
    %c0_64 = arith.constant 0 : index
    %c1_65 = arith.constant 1 : index
    %c2_66 = arith.constant 2 : index
    %95 = vector.load %arg1[%c0_63, %c0_64, %c1_65, %c2_66] : memref<1x1x34x10xf32, #tpu.memory_space<vmem>>, vector<1x1x32x8xf32>
    %96 = vector.shape_cast %95 : vector<1x1x32x8xf32> to vector<32x8xf32>
    %97 = vector.broadcast %94 : f32 to vector<32x8xf32>
    %98 = arith.mulf %97, %96 : vector<32x8xf32>
    %99 = arith.addf %93, %98 : vector<32x8xf32>
    %c15 = arith.constant 15 : index
    %100 = memref.load %arg2[%c15] : memref<36xf32, #tpu.memory_space<smem>>
    %c0_67 = arith.constant 0 : index
    %c0_68 = arith.constant 0 : index
    %c2_69 = arith.constant 2 : index
    %c0_70 = arith.constant 0 : index
    %101 = vector.load %arg1[%c0_67, %c0_68, %c2_69, %c0_70] : memref<1x1x34x10xf32, #tpu.memory_space<vmem>>, vector<1x1x32x8xf32>
    %102 = vector.shape_cast %101 : vector<1x1x32x8xf32> to vector<32x8xf32>
    %103 = vector.broadcast %100 : f32 to vector<32x8xf32>
    %104 = arith.mulf %103, %102 : vector<32x8xf32>
    %105 = arith.addf %99, %104 : vector<32x8xf32>
    %c16 = arith.constant 16 : index
    %106 = memref.load %arg2[%c16] : memref<36xf32, #tpu.memory_space<smem>>
    %c0_71 = arith.constant 0 : index
    %c0_72 = arith.constant 0 : index
    %c2_73 = arith.constant 2 : index
    %c1_74 = arith.constant 1 : index
    %107 = vector.load %arg1[%c0_71, %c0_72, %c2_73, %c1_74] : memref<1x1x34x10xf32, #tpu.memory_space<vmem>>, vector<1x1x32x8xf32>
    %108 = vector.shape_cast %107 : vector<1x1x32x8xf32> to vector<32x8xf32>
    %109 = vector.broadcast %106 : f32 to vector<32x8xf32>
    %110 = arith.mulf %109, %108 : vector<32x8xf32>
    %111 = arith.addf %105, %110 : vector<32x8xf32>
    %c17 = arith.constant 17 : index
    %112 = memref.load %arg2[%c17] : memref<36xf32, #tpu.memory_space<smem>>
    %c0_75 = arith.constant 0 : index
    %c0_76 = arith.constant 0 : index
    %c2_77 = arith.constant 2 : index
    %c2_78 = arith.constant 2 : index
    %113 = vector.load %arg1[%c0_75, %c0_76, %c2_77, %c2_78] : memref<1x1x34x10xf32, #tpu.memory_space<vmem>>, vector<1x1x32x8xf32>
    %114 = vector.shape_cast %113 : vector<1x1x32x8xf32> to vector<32x8xf32>
    %115 = vector.broadcast %112 : f32 to vector<32x8xf32>
    %116 = arith.mulf %115, %114 : vector<32x8xf32>
    %117 = arith.addf %111, %116 : vector<32x8xf32>
    %c1_79 = arith.constant 1 : index
    %118 = memref.load %arg3[%c1_79] : memref<4xf32, #tpu.memory_space<smem>>
    %119 = vector.broadcast %118 : f32 to vector<32x8xf32>
    %120 = arith.addf %117, %119 : vector<32x8xf32>
    %cst_80 = arith.constant 0.000000e+00 : f32
    %121 = vector.broadcast %cst_80 : f32 to vector<32x8xf32>
    %122 = arith.maximumf %120, %121 : vector<32x8xf32>
    %c0_81 = arith.constant 0 : index
    %c1_82 = arith.constant 1 : index
    %c0_83 = arith.constant 0 : index
    %c0_84 = arith.constant 0 : index
    %123 = vector.load %arg4[%c0_81, %c1_82, %c0_83, %c0_84] : memref<1x4x32x8xf32, #tpu.memory_space<vmem>>, vector<1x1x32x8xf32>
    %124 = vector.shape_cast %123 : vector<1x1x32x8xf32> to vector<32x8xf32>
    %125 = vector.shape_cast %122 : vector<32x8xf32> to vector<1x1x32x8xf32>
    tpu.vector_store %arg4[%c0_81, %c1_82, %c0_83, %c0_84], %125 {strides = array<i32>} : memref<1x4x32x8xf32, #tpu.memory_space<vmem>>, vector<1x1x32x8xf32>,
    %cst_85 = arith.constant 0.000000e+00 : f32
    %126 = vector.broadcast %cst_85 : f32 to vector<32x8xf32>
    %c18 = arith.constant 18 : index
    %127 = memref.load %arg2[%c18] : memref<36xf32, #tpu.memory_space<smem>>
    %c0_86 = arith.constant 0 : index
    %c0_87 = arith.constant 0 : index
    %c0_88 = arith.constant 0 : index
    %c0_89 = arith.constant 0 : index
    %128 = vector.load %arg1[%c0_86, %c0_87, %c0_88, %c0_89] : memref<1x1x34x10xf32, #tpu.memory_space<vmem>>, vector<1x1x32x8xf32>
    %129 = vector.shape_cast %128 : vector<1x1x32x8xf32> to vector<32x8xf32>
    %130 = vector.broadcast %127 : f32 to vector<32x8xf32>
    %131 = arith.mulf %130, %129 : vector<32x8xf32>
    %132 = arith.addf %126, %131 : vector<32x8xf32>
    %c19 = arith.constant 19 : index
    %133 = memref.load %arg2[%c19] : memref<36xf32, #tpu.memory_space<smem>>
    %c0_90 = arith.constant 0 : index
    %c0_91 = arith.constant 0 : index
    %c0_92 = arith.constant 0 : index
    %c1_93 = arith.constant 1 : index
    %134 = vector.load %arg1[%c0_90, %c0_91, %c0_92, %c1_93] : memref<1x1x34x10xf32, #tpu.memory_space<vmem>>, vector<1x1x32x8xf32>
    %135 = vector.shape_cast %134 : vector<1x1x32x8xf32> to vector<32x8xf32>
    %136 = vector.broadcast %133 : f32 to vector<32x8xf32>
    %137 = arith.mulf %136, %135 : vector<32x8xf32>
    %138 = arith.addf %132, %137 : vector<32x8xf32>
    %c20 = arith.constant 20 : index
    %139 = memref.load %arg2[%c20] : memref<36xf32, #tpu.memory_space<smem>>
    %c0_94 = arith.constant 0 : index
    %c0_95 = arith.constant 0 : index
    %c0_96 = arith.constant 0 : index
    %c2_97 = arith.constant 2 : index
    %140 = vector.load %arg1[%c0_94, %c0_95, %c0_96, %c2_97] : memref<1x1x34x10xf32, #tpu.memory_space<vmem>>, vector<1x1x32x8xf32>
    %141 = vector.shape_cast %140 : vector<1x1x32x8xf32> to vector<32x8xf32>
    %142 = vector.broadcast %139 : f32 to vector<32x8xf32>
    %143 = arith.mulf %142, %141 : vector<32x8xf32>
    %144 = arith.addf %138, %143 : vector<32x8xf32>
    %c21 = arith.constant 21 : index
    %145 = memref.load %arg2[%c21] : memref<36xf32, #tpu.memory_space<smem>>
    %c0_98 = arith.constant 0 : index
    %c0_99 = arith.constant 0 : index
    %c1_100 = arith.constant 1 : index
    %c0_101 = arith.constant 0 : index
    %146 = vector.load %arg1[%c0_98, %c0_99, %c1_100, %c0_101] : memref<1x1x34x10xf32, #tpu.memory_space<vmem>>, vector<1x1x32x8xf32>
    %147 = vector.shape_cast %146 : vector<1x1x32x8xf32> to vector<32x8xf32>
    %148 = vector.broadcast %145 : f32 to vector<32x8xf32>
    %149 = arith.mulf %148, %147 : vector<32x8xf32>
    %150 = arith.addf %144, %149 : vector<32x8xf32>
    %c22 = arith.constant 22 : index
    %151 = memref.load %arg2[%c22] : memref<36xf32, #tpu.memory_space<smem>>
    %c0_102 = arith.constant 0 : index
    %c0_103 = arith.constant 0 : index
    %c1_104 = arith.constant 1 : index
    %c1_105 = arith.constant 1 : index
    %152 = vector.load %arg1[%c0_102, %c0_103, %c1_104, %c1_105] : memref<1x1x34x10xf32, #tpu.memory_space<vmem>>, vector<1x1x32x8xf32>
    %153 = vector.shape_cast %152 : vector<1x1x32x8xf32> to vector<32x8xf32>
    %154 = vector.broadcast %151 : f32 to vector<32x8xf32>
    %155 = arith.mulf %154, %153 : vector<32x8xf32>
    %156 = arith.addf %150, %155 : vector<32x8xf32>
    %c23 = arith.constant 23 : index
    %157 = memref.load %arg2[%c23] : memref<36xf32, #tpu.memory_space<smem>>
    %c0_106 = arith.constant 0 : index
    %c0_107 = arith.constant 0 : index
    %c1_108 = arith.constant 1 : index
    %c2_109 = arith.constant 2 : index
    %158 = vector.load %arg1[%c0_106, %c0_107, %c1_108, %c2_109] : memref<1x1x34x10xf32, #tpu.memory_space<vmem>>, vector<1x1x32x8xf32>
    %159 = vector.shape_cast %158 : vector<1x1x32x8xf32> to vector<32x8xf32>
    %160 = vector.broadcast %157 : f32 to vector<32x8xf32>
    %161 = arith.mulf %160, %159 : vector<32x8xf32>
    %162 = arith.addf %156, %161 : vector<32x8xf32>
    %c24 = arith.constant 24 : index
    %163 = memref.load %arg2[%c24] : memref<36xf32, #tpu.memory_space<smem>>
    %c0_110 = arith.constant 0 : index
    %c0_111 = arith.constant 0 : index
    %c2_112 = arith.constant 2 : index
    %c0_113 = arith.constant 0 : index
    %164 = vector.load %arg1[%c0_110, %c0_111, %c2_112, %c0_113] : memref<1x1x34x10xf32, #tpu.memory_space<vmem>>, vector<1x1x32x8xf32>
    %165 = vector.shape_cast %164 : vector<1x1x32x8xf32> to vector<32x8xf32>
    %166 = vector.broadcast %163 : f32 to vector<32x8xf32>
    %167 = arith.mulf %166, %165 : vector<32x8xf32>
    %168 = arith.addf %162, %167 : vector<32x8xf32>
    %c25 = arith.constant 25 : index
    %169 = memref.load %arg2[%c25] : memref<36xf32, #tpu.memory_space<smem>>
    %c0_114 = arith.constant 0 : index
    %c0_115 = arith.constant 0 : index
    %c2_116 = arith.constant 2 : index
    %c1_117 = arith.constant 1 : index
    %170 = vector.load %arg1[%c0_114, %c0_115, %c2_116, %c1_117] : memref<1x1x34x10xf32, #tpu.memory_space<vmem>>, vector<1x1x32x8xf32>
    %171 = vector.shape_cast %170 : vector<1x1x32x8xf32> to vector<32x8xf32>
    %172 = vector.broadcast %169 : f32 to vector<32x8xf32>
    %173 = arith.mulf %172, %171 : vector<32x8xf32>
    %174 = arith.addf %168, %173 : vector<32x8xf32>
    %c26 = arith.constant 26 : index
    %175 = memref.load %arg2[%c26] : memref<36xf32, #tpu.memory_space<smem>>
    %c0_118 = arith.constant 0 : index
    %c0_119 = arith.constant 0 : index
    %c2_120 = arith.constant 2 : index
    %c2_121 = arith.constant 2 : index
    %176 = vector.load %arg1[%c0_118, %c0_119, %c2_120, %c2_121] : memref<1x1x34x10xf32, #tpu.memory_space<vmem>>, vector<1x1x32x8xf32>
    %177 = vector.shape_cast %176 : vector<1x1x32x8xf32> to vector<32x8xf32>
    %178 = vector.broadcast %175 : f32 to vector<32x8xf32>
    %179 = arith.mulf %178, %177 : vector<32x8xf32>
    %180 = arith.addf %174, %179 : vector<32x8xf32>
    %c2_122 = arith.constant 2 : index
    %181 = memref.load %arg3[%c2_122] : memref<4xf32, #tpu.memory_space<smem>>
    %182 = vector.broadcast %181 : f32 to vector<32x8xf32>
    %183 = arith.addf %180, %182 : vector<32x8xf32>
    %cst_123 = arith.constant 0.000000e+00 : f32
    %184 = vector.broadcast %cst_123 : f32 to vector<32x8xf32>
    %185 = arith.maximumf %183, %184 : vector<32x8xf32>
    %c0_124 = arith.constant 0 : index
    %c2_125 = arith.constant 2 : index
    %c0_126 = arith.constant 0 : index
    %c0_127 = arith.constant 0 : index
    %186 = vector.load %arg4[%c0_124, %c2_125, %c0_126, %c0_127] : memref<1x4x32x8xf32, #tpu.memory_space<vmem>>, vector<1x1x32x8xf32>
    %187 = vector.shape_cast %186 : vector<1x1x32x8xf32> to vector<32x8xf32>
    %188 = vector.shape_cast %185 : vector<32x8xf32> to vector<1x1x32x8xf32>
    tpu.vector_store %arg4[%c0_124, %c2_125, %c0_126, %c0_127], %188 {strides = array<i32>} : memref<1x4x32x8xf32, #tpu.memory_space<vmem>>, vector<1x1x32x8xf32>,
    %cst_128 = arith.constant 0.000000e+00 : f32
    %189 = vector.broadcast %cst_128 : f32 to vector<32x8xf32>
    %c27 = arith.constant 27 : index
    %190 = memref.load %arg2[%c27] : memref<36xf32, #tpu.memory_space<smem>>
    %c0_129 = arith.constant 0 : index
    %c0_130 = arith.constant 0 : index
    %c0_131 = arith.constant 0 : index
    %c0_132 = arith.constant 0 : index
    %191 = vector.load %arg1[%c0_129, %c0_130, %c0_131, %c0_132] : memref<1x1x34x10xf32, #tpu.memory_space<vmem>>, vector<1x1x32x8xf32>
    %192 = vector.shape_cast %191 : vector<1x1x32x8xf32> to vector<32x8xf32>
    %193 = vector.broadcast %190 : f32 to vector<32x8xf32>
    %194 = arith.mulf %193, %192 : vector<32x8xf32>
    %195 = arith.addf %189, %194 : vector<32x8xf32>
    %c28 = arith.constant 28 : index
    %196 = memref.load %arg2[%c28] : memref<36xf32, #tpu.memory_space<smem>>
    %c0_133 = arith.constant 0 : index
    %c0_134 = arith.constant 0 : index
    %c0_135 = arith.constant 0 : index
    %c1_136 = arith.constant 1 : index
    %197 = vector.load %arg1[%c0_133, %c0_134, %c0_135, %c1_136] : memref<1x1x34x10xf32, #tpu.memory_space<vmem>>, vector<1x1x32x8xf32>
    %198 = vector.shape_cast %197 : vector<1x1x32x8xf32> to vector<32x8xf32>
    %199 = vector.broadcast %196 : f32 to vector<32x8xf32>
    %200 = arith.mulf %199, %198 : vector<32x8xf32>
    %201 = arith.addf %195, %200 : vector<32x8xf32>
    %c29 = arith.constant 29 : index
    %202 = memref.load %arg2[%c29] : memref<36xf32, #tpu.memory_space<smem>>
    %c0_137 = arith.constant 0 : index
    %c0_138 = arith.constant 0 : index
    %c0_139 = arith.constant 0 : index
    %c2_140 = arith.constant 2 : index
    %203 = vector.load %arg1[%c0_137, %c0_138, %c0_139, %c2_140] : memref<1x1x34x10xf32, #tpu.memory_space<vmem>>, vector<1x1x32x8xf32>
    %204 = vector.shape_cast %203 : vector<1x1x32x8xf32> to vector<32x8xf32>
    %205 = vector.broadcast %202 : f32 to vector<32x8xf32>
    %206 = arith.mulf %205, %204 : vector<32x8xf32>
    %207 = arith.addf %201, %206 : vector<32x8xf32>
    %c30 = arith.constant 30 : index
    %208 = memref.load %arg2[%c30] : memref<36xf32, #tpu.memory_space<smem>>
    %c0_141 = arith.constant 0 : index
    %c0_142 = arith.constant 0 : index
    %c1_143 = arith.constant 1 : index
    %c0_144 = arith.constant 0 : index
    %209 = vector.load %arg1[%c0_141, %c0_142, %c1_143, %c0_144] : memref<1x1x34x10xf32, #tpu.memory_space<vmem>>, vector<1x1x32x8xf32>
    %210 = vector.shape_cast %209 : vector<1x1x32x8xf32> to vector<32x8xf32>
    %211 = vector.broadcast %208 : f32 to vector<32x8xf32>
    %212 = arith.mulf %211, %210 : vector<32x8xf32>
    %213 = arith.addf %207, %212 : vector<32x8xf32>
    %c31 = arith.constant 31 : index
    %214 = memref.load %arg2[%c31] : memref<36xf32, #tpu.memory_space<smem>>
    %c0_145 = arith.constant 0 : index
    %c0_146 = arith.constant 0 : index
    %c1_147 = arith.constant 1 : index
    %c1_148 = arith.constant 1 : index
    %215 = vector.load %arg1[%c0_145, %c0_146, %c1_147, %c1_148] : memref<1x1x34x10xf32, #tpu.memory_space<vmem>>, vector<1x1x32x8xf32>
    %216 = vector.shape_cast %215 : vector<1x1x32x8xf32> to vector<32x8xf32>
    %217 = vector.broadcast %214 : f32 to vector<32x8xf32>
    %218 = arith.mulf %217, %216 : vector<32x8xf32>
    %219 = arith.addf %213, %218 : vector<32x8xf32>
    %c32 = arith.constant 32 : index
    %220 = memref.load %arg2[%c32] : memref<36xf32, #tpu.memory_space<smem>>
    %c0_149 = arith.constant 0 : index
    %c0_150 = arith.constant 0 : index
    %c1_151 = arith.constant 1 : index
    %c2_152 = arith.constant 2 : index
    %221 = vector.load %arg1[%c0_149, %c0_150, %c1_151, %c2_152] : memref<1x1x34x10xf32, #tpu.memory_space<vmem>>, vector<1x1x32x8xf32>
    %222 = vector.shape_cast %221 : vector<1x1x32x8xf32> to vector<32x8xf32>
    %223 = vector.broadcast %220 : f32 to vector<32x8xf32>
    %224 = arith.mulf %223, %222 : vector<32x8xf32>
    %225 = arith.addf %219, %224 : vector<32x8xf32>
    %c33 = arith.constant 33 : index
    %226 = memref.load %arg2[%c33] : memref<36xf32, #tpu.memory_space<smem>>
    %c0_153 = arith.constant 0 : index
    %c0_154 = arith.constant 0 : index
    %c2_155 = arith.constant 2 : index
    %c0_156 = arith.constant 0 : index
    %227 = vector.load %arg1[%c0_153, %c0_154, %c2_155, %c0_156] : memref<1x1x34x10xf32, #tpu.memory_space<vmem>>, vector<1x1x32x8xf32>
    %228 = vector.shape_cast %227 : vector<1x1x32x8xf32> to vector<32x8xf32>
    %229 = vector.broadcast %226 : f32 to vector<32x8xf32>
    %230 = arith.mulf %229, %228 : vector<32x8xf32>
    %231 = arith.addf %225, %230 : vector<32x8xf32>
    %c34 = arith.constant 34 : index
    %232 = memref.load %arg2[%c34] : memref<36xf32, #tpu.memory_space<smem>>
    %c0_157 = arith.constant 0 : index
    %c0_158 = arith.constant 0 : index
    %c2_159 = arith.constant 2 : index
    %c1_160 = arith.constant 1 : index
    %233 = vector.load %arg1[%c0_157, %c0_158, %c2_159, %c1_160] : memref<1x1x34x10xf32, #tpu.memory_space<vmem>>, vector<1x1x32x8xf32>
    %234 = vector.shape_cast %233 : vector<1x1x32x8xf32> to vector<32x8xf32>
    %235 = vector.broadcast %232 : f32 to vector<32x8xf32>
    %236 = arith.mulf %235, %234 : vector<32x8xf32>
    %237 = arith.addf %231, %236 : vector<32x8xf32>
    %c35 = arith.constant 35 : index
    %238 = memref.load %arg2[%c35] : memref<36xf32, #tpu.memory_space<smem>>
    %c0_161 = arith.constant 0 : index
    %c0_162 = arith.constant 0 : index
    %c2_163 = arith.constant 2 : index
    %c2_164 = arith.constant 2 : index
    %239 = vector.load %arg1[%c0_161, %c0_162, %c2_163, %c2_164] : memref<1x1x34x10xf32, #tpu.memory_space<vmem>>, vector<1x1x32x8xf32>
    %240 = vector.shape_cast %239 : vector<1x1x32x8xf32> to vector<32x8xf32>
    %241 = vector.broadcast %238 : f32 to vector<32x8xf32>
    %242 = arith.mulf %241, %240 : vector<32x8xf32>
    %243 = arith.addf %237, %242 : vector<32x8xf32>
    %c3_165 = arith.constant 3 : index
    %244 = memref.load %arg3[%c3_165] : memref<4xf32, #tpu.memory_space<smem>>
    %245 = vector.broadcast %244 : f32 to vector<32x8xf32>
    %246 = arith.addf %243, %245 : vector<32x8xf32>
    %cst_166 = arith.constant 0.000000e+00 : f32
    %247 = vector.broadcast %cst_166 : f32 to vector<32x8xf32>
    %248 = arith.maximumf %246, %247 : vector<32x8xf32>
    %c0_167 = arith.constant 0 : index
    %c3_168 = arith.constant 3 : index
    %c0_169 = arith.constant 0 : index
    %c0_170 = arith.constant 0 : index
    %249 = vector.load %arg4[%c0_167, %c3_168, %c0_169, %c0_170] : memref<1x4x32x8xf32, #tpu.memory_space<vmem>>, vector<1x1x32x8xf32>
    %250 = vector.shape_cast %249 : vector<1x1x32x8xf32> to vector<32x8xf32>
    %251 = vector.shape_cast %248 : vector<32x8xf32> to vector<1x1x32x8xf32>
    tpu.vector_store %arg4[%c0_167, %c3_168, %c0_169, %c0_170], %251 {strides = array<i32>} : memref<1x4x32x8xf32, #tpu.memory_space<vmem>>, vector<1x1x32x8xf32>,
    return
  }
  func.func @transform_0(%arg0: i32) -> (i32, i32, i32, i32) {
    %c0_i32 = arith.constant 0 : i32
    %c0_i32_0 = arith.constant 0 : i32
    %c0_i32_1 = arith.constant 0 : i32
    %c0_i32_2 = arith.constant 0 : i32
    return %arg0, %c0_i32, %c0_i32_0, %c0_i32_1 : i32, i32, i32, i32
  }
  func.func @transform_1(%arg0: i32) -> i32 {
    %c0_i32 = arith.constant 0 : i32
    %c0_i32_0 = arith.constant 0 : i32
    return %c0_i32 : i32
  }
  func.func @transform_2(%arg0: i32) -> i32 {
    %c0_i32 = arith.constant 0 : i32
    %c0_i32_0 = arith.constant 0 : i32
    return %c0_i32 : i32
  }
  func.func @transform_3(%arg0: i32) -> (i32, i32, i32, i32) {
    %c0_i32 = arith.constant 0 : i32
    %c0_i32_0 = arith.constant 0 : i32
    %c0_i32_1 = arith.constant 0 : i32
    %c0_i32_2 = arith.constant 0 : i32
    return %arg0, %c0_i32, %c0_i32_0, %c0_i32_1 : i32, i32, i32, i32
  }
}

</mosaic_0001>

<bundles_post_ra>
// kernel: tpu_custom_call.1
= control target key start
LH: loop header
LB: loop body
LE: loop exit
PB: predicated region body
PF: predicated region fallthrough
CT: control target
= control target key end

     0   :  { %8 = vsyncpa [#allocation3], 0  ;;  %s1741_s0 = inlined_call_operand.vmem [shape: f32[2,1,34,10], index: 0, kind: input, shape index: {}]   ;;  %s1742_s1 = inlined_call_operand.vmem [shape: f32[36], index: 1, kind: input, shape index: {}]   ;;  %s1743_s2 = inlined_call_operand.vmem [shape: f32[4], index: 2, kind: input, shape index: {}]   ;;  %s1744_s3 = inlined_call_operand.vmem [shape: f32[2,4,32,8], index: 3, kind: output, shape index: {}]  }
   0x1   :  { %9 = vsyncpa [#allocation5], 0  ;;  %s1294_s12 = smov 0  }
   0x2 LB: > { %s1300_s13 = sadd.s32 4294967295, %s1268_s12   ;;  %p1129_p0 = scmp.ge.s32.totalorder %s1268_s12, 1  ;;  %s1268_s12 = sphi %s1294_s12, %s15_s12  }
   0x3   : > { %p114_p1 = scmp.lt.s32.totalorder %s1268_s12, 3  ;;  %s127_s16 = sshll.u32 %s1742_s1, 4  ;;  %s128_s16 = int_to_ptr.vmem [resolvable:$true] %s127_s16 }
   0x4   : > { %p1745_p3 = scmp.eq.s32.totalorder %s1300_s13, 0  ;;  %s138_s20 = sshll.u32 %s1743_s2, 4  ;;  %s139_s20 = int_to_ptr.vmem [resolvable:$true] %s138_s20 }
   0x5   : > { %p1307_p2 = pnand %p1129_p0, %p114_p1  ;;  %s1224_s22 = scalar_lea.vmem %s128_s16, 16 }
   0x6   : > { %p1225_p6 = scmp.ne.s32.totalorder %s128_s16, %s1224_s22  ;;  %p1232_p10 = scmp.lt.s32.totalorder %s128_s16, %s128_s16 }
   0x7   : > { %s1747_s17 = scalar_select %p1307_p2, 1, 0 }
   0x8   : > { %p1201_p4 = pneg %p1307_p2  ;;  %p1233_p11 = scmp.lt.s32.totalorder %s1224_s22, %s1224_s22 }
   0xa   : > { %p1319_p5 = pnand %p1745_p3, %p1201_p4  ;;  %p1234_p12 = por %p1233_p11, %p1232_p10 }
   0xc   : > { %p1226_p7 = pneg %p1319_p5 }
   0xe   : > { %p1227_p8 = pnand %p1226_p7, %p1225_p6 }
  0x10   : > { %p1228_p9 = pneg %p1227_p8 }
  0x12   : > { %p1235_p13 = pnand %p1234_p12, %p1228_p9 }
  0x14   : > { %1238 = shalt.err (!%p1235_p13)
}
  0x15   : > { %s1270_s23 = smov [#allocation2]   ;;  %s1239_s24 = scalar_lea.vmem %s139_s20, 16 }
  0x16   : > { %1204 = dma.vmem_to_smem (!%p1319_p5), %s128_s16, 16, %s1270_s23, [#allocation3]  }
  0x17   : > { %p1240_p0 = scmp.ne.s32.totalorder %s139_s20, %s1239_s24  ;;  %p1247_p3 = scmp.lt.s32.totalorder %s139_s20, %s139_s20 }
  0x18   : > { %p1248_p2 = scmp.lt.s32.totalorder %s1239_s24, %s1239_s24 }
  0x19   : > { %p1242_p1 = pnand %p1240_p0, %p1226_p7 }
  0x1a   : > { %p1249_p6 = por %p1248_p2, %p1247_p3 }
  0x1b   : > { %p1243_p4 = pneg %p1242_p1 }
  0x1d   : > { %p1250_p8 = pnand %p1249_p6, %p1243_p4 }
  0x1f   : > { %1253 = shalt.err (!%p1250_p8)
}
  0x20   : > { %s1271_s25 = smov [#allocation4]   ;;  %p1749_p9 = scmp.ne.s32.totalorder %s1747_s17, 0 }
  0x21   : > { %1207 = dma.vmem_to_smem (!%p1319_p5), %s139_s20, 16, %s1271_s25, [#allocation5]  }
  0x22   : > { %159 = sbr.rel (%p1749_p9) target bundleno = 369 (0x171), region = 32 }
  0x29   : > { %p1750_p10 = scmp.eq.s32.totalorder %s1300_s13, 0 }
  0x2b   : > { %1259 = dma.done.wait (%p1750_p10), [#allocation3], 16   ;;  %p1751_p11 = pmov %p1750_p10 }
  0x2c   : > { %p1752_p7 = pmov %p1750_p10 }
  0x2d   : > { %1261 = vsyncadd (%p1751_p11), [#allocation3], 4294967280 }
  0x2e   : > { %1263 = dma.done.wait (%p1752_p7), [#allocation5], 16   ;;  %p1753_p2 = pmov %p1752_p7 }
  0x30   : > { %1265 = vsyncadd (%p1753_p2), [#allocation5], 4294967280 }
  0x31   : > { %169 = sfence }
  0x32   : > { %p188_p3 = scmp.lt.s32.totalorder %s1300_s13, 1  ;;  %s1139_s26 = sld [smem:[#allocation2 + $0x1]]  ;;  %vm406_vm0 = vcmask 64512  }
  0x33   : > { %s1140_s27 = sld [smem:[#allocation2 + $0x2]]  ;;  %s1272_s5 = smov 127  }
  0x34   : > { %s1757_s13 = smov (!%p188_p3, %s1300_s13), 1  ;;  %s1142_s6 = sld [smem:[#allocation2 + $0x4]] }
  0x35   : > { %s1192_s28 = smul.u32 40, %s1757_s13  ;;  %s1273_s7 = smov 126  }
  0x36   : > { %s1143_s8 = sld [smem:[#allocation2 + $0x5]]  ;;  %s1145_s9 = sld [smem:[#allocation2 + $0x7]] }
  0x37   : > { %s1347_s4 = scalar_lea.vmem %s1741_s0, %s1192_s28  ;;  %s1146_s10 = sld [smem:[#allocation2 + $0x8]] }
  0x38   : > { %v213_v0 = vstv %s1139_s26  ;;  %v1350_v1 = vld [vmem:[%s1347_s4 + $0x10] sm:$0xff]  ;;  %v1353_v2 = vld [vmem:[%s1347_s4] sm:$0xff]  ;;  %v1356_v3 = vld [vmem:[%s1347_s4 + $0x18] sm:$0xff]  ;;  %s1148_s11 = sld [smem:[#allocation2 + $0xa]]  ;;  %s1149_s14 = sld [smem:[#allocation2 + $0xb]] }
  0x39   : > { %v216_v4 = vmul.f32 %v213_v0, %v1350_v1  ;;  %v214_v5 = vmul.f32 %v213_v0, %v1353_v2  ;;  %v1361_v6 = vld [vmem:[%s1347_s4 + $0x8] sm:$0xff]  ;;  %v217_v7 = vmul.f32 %v213_v0, %v1356_v3  ;;  %v239_v9 = vstv %s1140_s27  ;;  %v1386_v19 = vld [vmem:[%s1347_s4 + $0x19] sm:$0xff]  ;;  %v1389_v20 = vld [vmem:[%s1347_s4 + $0x11] sm:$0xff]  ;;  %s1151_s15 = sld [smem:[#allocation2 + $0xd]]  ;;  %s1152_s16 = sld [smem:[#allocation2 + $0xe]] }
  0x3a   : > { %v215_v8 = vmul.f32 %v213_v0, %v1361_v6  ;;  %v241_v10 = vmul.f32 %v239_v9, %v1361_v6  ;;  %v240_v11 = vmul.f32 %v239_v9, %v1353_v2  ;;  %v243_v12 = vmul.f32 %v239_v9, %v1356_v3  ;;  %v1376_v14 = vld [vmem:[%s1347_s4 + $0x9] sm:$0xff]  ;;  %v1379_v16 = vld [vmem:[%s1347_s4 + $0x1] sm:$0xff]  ;;  %v1417_v34 = vld [vmem:[%s1347_s4 + $0x12] sm:$0xff]  ;;  %s1154_s17 = sld [smem:[#allocation2 + $0x10]]  ;;  %s1155_s18 = sld [smem:[#allocation2 + $0x11]] }
  0x3b   : > { %226 = vrot.lane.b32.xlu1 %v216_v4, %s1272_s5  ;;  %222 = vrot.lane.b32.xlu0 %v214_v5, %s1272_s5  ;;  %v242_v13 = vmul.f32 %v239_v9, %v1350_v1  ;;  %v279_v15 = vstv %s1142_s6  ;;  %v1404_v28 = vld [vmem:[%s1347_s4 + $0xa] sm:$0xff]  ;;  %s1162_s19 = sld [smem:[#allocation2 + $0x13]]  ;;  %s1163_s20 = sld [smem:[#allocation2 + $0x14]] }
  0x3c   : > { %v281_v17 = vmul.f32 %v279_v15, %v1376_v14  ;;  %v280_v18 = vmul.f32 %v279_v15, %v1379_v16  ;;  %v283_v21 = vmul.f32 %v279_v15, %v1386_v19  ;;  %v282_v22 = vmul.f32 %v279_v15, %v1389_v20  ;;  %v1407_v30 = vld [vmem:[%s1347_s4 + $0x2] sm:$0xff]  ;;  %v1414_v33 = vld [vmem:[%s1347_s4 + $0x1a] sm:$0xff]  ;;  %s1176_s21 = sld [smem:[#allocation2 + $0x1c]]  ;;  %s1165_s22 = sld [smem:[#allocation2 + $0x16]] }
  0x3d   : > { %v305_v23 = vstv %s1143_s8  ;;  %v345_v29 = vstv %s1145_s9  ;;  %v371_v37 = vstv %s1146_s10  ;;  %s1177_s23 = sld [smem:[#allocation2 + $0x1d]]  ;;  %s1179_s24 = sld [smem:[#allocation2 + $0x1f]] }
  0x3e   : > { %v307_v24 = vmul.f32 %v305_v23, %v1376_v14  ;;  %v306_v25 = vmul.f32 %v305_v23, %v1379_v16  ;;  %v309_v26 = vmul.f32 %v305_v23, %v1386_v19  ;;  %v308_v27 = vmul.f32 %v305_v23, %v1389_v20  ;;  %s198_s25 = sld [smem:[#allocation2]]  ;;  %s1141_s26 = sld [smem:[#allocation2 + $0x3]] }
  0x3f   : > { %228 = vrot.lane.b32.xlu1 %v217_v7, %s1272_s5  ;;  %224 = vrot.lane.b32.xlu0 %v215_v8, %s1272_s5  ;;  %v347_v31 = vmul.f32 %v345_v29, %v1404_v28  ;;  %v346_v32 = vmul.f32 %v345_v29, %v1407_v30  ;;  %v349_v35 = vmul.f32 %v345_v29, %v1414_v33  ;;  %v426_v42 = vstv %s1148_s11  ;;  %s1166_s27 = sld [smem:[#allocation2 + $0x17]]  ;;  %s1144_s28 = sld [smem:[#allocation2 + $0x6]] }
  0x40   : > { %v348_v36 = vmul.f32 %v345_v29, %v1417_v34  ;;  %v373_v38 = vmul.f32 %v371_v37, %v1404_v28  ;;  %v372_v39 = vmul.f32 %v371_v37, %v1407_v30  ;;  %v375_v40 = vmul.f32 %v371_v37, %v1414_v33  ;;  %s1180_s29 = sld [smem:[#allocation2 + $0x20]]  ;;  %s1168_s30 = sld [smem:[#allocation2 + $0x19]] }
  0x41   : > { %v374_v41 = vmul.f32 %v371_v37, %v1417_v34  ;;  %v428_v43 = vmul.f32 %v426_v42, %v1361_v6  ;;  %v427_v44 = vmul.f32 %v426_v42, %v1353_v2  ;;  %v430_v45 = vmul.f32 %v426_v42, %v1356_v3  ;;  %s396_s4 = sld [smem:[#allocation4]]  ;;  %s1555_s6 = sld [smem:[#allocation2 + $0x22]] }
  0x42   : > { %v429_v46 = vmul.f32 %v426_v42, %v1350_v1  ;;  %v452_v47 = vstv %s1149_s14  ;;  %v492_v52 = vstv %s1151_s15  ;;  %v518_v57 = vstv %s1152_s16  ;;  %s1191_s8 = sshll.u32 %s1757_s13, 7  ;;  %s1169_s13 = sld [smem:[#allocation2 + $0x1a]] }
  0x43   : > { %250 = vrot.lane.b32.xlu1 %v241_v10, %s1273_s7  ;;  %248 = vrot.lane.b32.xlu0 %v240_v11, %s1273_s7  ;;  %v454_v48 = vmul.f32 %v452_v47, %v1361_v6  ;;  %v453_v49 = vmul.f32 %v452_v47, %v1353_v2  ;;  %v456_v50 = vmul.f32 %v452_v47, %v1356_v3  ;;  %v558_v62 = vstv %s1154_s17  ;;  %s1565_s11 = scalar_lea.vmem %s1744_s3, %s1191_s8  ;;  %s1183_s14 = sld [smem:[#allocation2 + $0x23]] }
  0x44   : > { %v455_v51 = vmul.f32 %v452_v47, %v1350_v1  ;;  %v494_v53 = vmul.f32 %v492_v52, %v1376_v14  ;;  %v493_v54 = vmul.f32 %v492_v52, %v1379_v16  ;;  %v496_v55 = vmul.f32 %v492_v52, %v1386_v19  ;;  %s1147_s15 = sld [smem:[#allocation2 + $0x9]]  ;;  %s1150_s16 = sld [smem:[#allocation2 + $0xc]] }
  0x45   : > { %v495_v56 = vmul.f32 %v492_v52, %v1389_v20  ;;  %v520_v58 = vmul.f32 %v518_v57, %v1376_v14  ;;  %v519_v59 = vmul.f32 %v518_v57, %v1379_v16  ;;  %v522_v60 = vmul.f32 %v518_v57, %v1386_v19  ;;  %s1161_s17 = sld [smem:[#allocation2 + $0x12]] }
  0x46   : > { %v521_v61 = vmul.f32 %v518_v57, %v1389_v20  ;;  %v560_v63 = vmul.f32 %v558_v62, %v1404_v28  ;;  %v559_v0 = vmul.f32 %v558_v62, %v1407_v30  ;;  %v562_v4 = vmul.f32 %v558_v62, %v1414_v33 }
  0x47   : > { %254 = vrot.lane.b32.xlu1 %v243_v12, %s1273_s7  ;;  %252 = vrot.lane.b32.xlu0 %v242_v13, %s1273_s7  ;;  %v561_v5 = vmul.f32 %v558_v62, %v1417_v34  ;;  %v584_v7 = vstv %s1155_s18  ;;  %v639_v12 = vstv %s1162_s19  ;;  %s1164_s18 = sld [smem:[#allocation2 + $0x15]]  ;;  %s1175_s19 = sld [smem:[#allocation2 + $0x1b]] }
  0x48   : > { %v586_v8 = vmul.f32 %v584_v7, %v1404_v28  ;;  %v585_v9 = vmul.f32 %v584_v7, %v1407_v30  ;;  %v588_v10 = vmul.f32 %v584_v7, %v1414_v33  ;;  %v587_v11 = vmul.f32 %v584_v7, %v1417_v34 }
  0x49   : > { %v641_v13 = vmul.f32 %v639_v12, %v1361_v6  ;;  %v640_v15 = vmul.f32 %v639_v12, %v1353_v2 }
  0x4b   : > { %290 = vrot.lane.b32.xlu1 %v281_v17, %s1272_s5  ;;  %288 = vrot.lane.b32.xlu0 %v280_v18, %s1272_s5  ;;  %v643_v17 = vmul.f32 %v639_v12, %v1356_v3  ;;  %v642_v18 = vmul.f32 %v639_v12, %v1350_v1 }
  0x4f   : > { %294 = vrot.lane.b32.xlu1 %v283_v21, %s1272_s5  ;;  %292 = vrot.lane.b32.xlu0 %v282_v22, %s1272_s5  ;;  %v665_v21 = vstv %s1163_s20  ;;  %s1178_s20 = sld [smem:[#allocation2 + $0x1e]] }
  0x50   : > { %v667_v22 = vmul.f32 %v665_v21, %v1361_v6  ;;  %v666_v23 = vmul.f32 %v665_v21, %v1353_v2 }
  0x53   : > { %316 = vrot.lane.b32.xlu1 %v307_v24, %s1273_s7  ;;  %314 = vrot.lane.b32.xlu0 %v306_v25, %s1273_s7  ;;  %v669_v24 = vmul.f32 %v665_v21, %v1356_v3  ;;  %v668_v25 = vmul.f32 %v665_v21, %v1350_v1 }
  0x57   : > { %320 = vrot.lane.b32.xlu1 %v309_v26, %s1273_s7  ;;  %318 = vrot.lane.b32.xlu0 %v308_v27, %s1273_s7  ;;  %v852_v26 = vstv %s1176_s21  ;;  %v705_v27 = vstv %s1165_s22  ;;  %s1167_s21 = sld [smem:[#allocation2 + $0x18]]  ;;  %s1672_s22 = sld [smem:[#allocation2 + $0x21]] }
  0x58   : > { %v853_v29 = vmul.f32 %v852_v26, %v1353_v2  ;;  %v707_v47 = vmul.f32 %v705_v27, %v1376_v14  ;;  %v708_v52 = vmul.f32 %v705_v27, %v1389_v20 }
  0x5b   : > { %356 = vrot.lane.b32.xlu1 %v347_v31, %s1272_s5  ;;  %354 = vrot.lane.b32.xlu0 %v346_v32, %s1272_s5  ;;  %v706_v31 = vmul.f32 %v705_v27, %v1379_v16  ;;  %v855_v32 = vmul.f32 %v852_v26, %v1350_v1 }
  0x5f   : > { %360 = vrot.lane.b32.xlu1 %v349_v35, %s1272_s5  ;;  %358 = vrot.lane.b32.xlu0 %v348_v36, %s1272_s5  ;;  %v854_v35 = vmul.f32 %v852_v26, %v1361_v6  ;;  %v878_v36 = vstv %s1177_s23  ;;  %s1686_s23 = sld [smem:[#allocation4 + $0x2]] }
  0x63   : > { %382 = vrot.lane.b32.xlu1 %v373_v38, %s1273_s7  ;;  %380 = vrot.lane.b32.xlu0 %v372_v39, %s1273_s7  ;;  %v879_v39 = vmul.f32 %v878_v36, %v1353_v2 }
  0x67   : > { %386 = vrot.lane.b32.xlu1 %v375_v40, %s1273_s7  ;;  %384 = vrot.lane.b32.xlu0 %v374_v41, %s1273_s7  ;;  %v856_v40 = vmul.f32 %v852_v26, %v1356_v3 }
  0x6b   : > { %437 = vrot.lane.b32.xlu1 %v428_v43, %s1272_s5  ;;  %435 = vrot.lane.b32.xlu0 %v427_v44, %s1272_s5  ;;  %v881_v43 = vmul.f32 %v878_v36, %v1350_v1  ;;  %v880_v44 = vmul.f32 %v878_v36, %v1361_v6 }
  0x6f   : > { %441 = vrot.lane.b32.xlu1 %v430_v45, %s1272_s5  ;;  %439 = vrot.lane.b32.xlu0 %v429_v46, %s1272_s5 }
  0x73   : > { %463 = vrot.lane.b32.xlu1 %v454_v48, %s1273_s7  ;;  %461 = vrot.lane.b32.xlu0 %v453_v49, %s1273_s7  ;;  %v882_v48 = vmul.f32 %v878_v36, %v1356_v3 }
  0x77   : > { %467 = vrot.lane.b32.xlu1 %v456_v50, %s1273_s7  ;;  %465 = vrot.lane.b32.xlu0 %v455_v51, %s1273_s7  ;;  %v709_v51 = vmul.f32 %v705_v27, %v1386_v19 }
  0x7b   : > { %503 = vrot.lane.b32.xlu1 %v494_v53, %s1272_s5  ;;  %501 = vrot.lane.b32.xlu0 %v493_v54, %s1272_s5  ;;  %v918_v53 = vstv %s1179_s24  ;;  %v203_v54 = vstv %s198_s25  ;;  %s1711_s24 = sld [smem:[#allocation4 + $0x3]] }
  0x7c   : > { %v920_v57 = vmul.f32 %v918_v53, %v1376_v14 }
  0x7f   : > { %507 = vrot.lane.b32.xlu1 %v496_v55, %s1272_s5  ;;  %505 = vrot.lane.b32.xlu0 %v495_v56, %s1272_s5 }
  0x83   : > { %529 = vrot.lane.b32.xlu1 %v520_v58, %s1273_s7  ;;  %527 = vrot.lane.b32.xlu0 %v519_v59, %s1273_s7  ;;  %v919_v58 = vmul.f32 %v918_v53, %v1379_v16  ;;  %v204_v59 = vmul.f32 %v203_v54, %v1353_v2 }
  0x87   : > { %533 = vrot.lane.b32.xlu1 %v522_v60, %s1273_s7  ;;  %531 = vrot.lane.b32.xlu0 %v521_v61, %s1273_s7  ;;  %v205_v60 = vmul.f32 %v203_v54, %v1361_v6 }
  0x8b   : > { %569 = vrot.lane.b32.xlu1 %v560_v63, %s1272_s5  ;;  %567 = vrot.lane.b32.xlu0 %v559_v0, %s1272_s5  ;;  %v206_v63 = vmul.f32 %v203_v54, %v1350_v1  ;;  %v269_v0 = vstv %s1141_s26 }
  0x8c   : > { %v272_v26 = vmul.f32 %v269_v0, %v1389_v20 }
  0x8f   : > { %573 = vrot.lane.b32.xlu1 %v562_v4, %s1272_s5  ;;  %571 = vrot.lane.b32.xlu0 %v561_v5, %s1272_s5  ;;  %v922_v4 = vmul.f32 %v918_v53, %v1386_v19  ;;  %v921_v5 = vmul.f32 %v918_v53, %v1389_v20 }
  0x93   : > { %595 = vrot.lane.b32.xlu1 %v586_v8, %s1273_s7  ;;  %593 = vrot.lane.b32.xlu0 %v585_v9, %s1273_s7  ;;  %v207_v8 = vmul.f32 %v203_v54, %v1356_v3 }
  0x97   : > { %599 = vrot.lane.b32.xlu1 %v588_v10, %s1273_s7  ;;  %597 = vrot.lane.b32.xlu0 %v587_v11, %s1273_s7  ;;  %v731_v10 = vstv %s1166_s27 }
  0x98   : > { %v733_v21 = vmul.f32 %v731_v10, %v1376_v14 }
  0x9b   : > { %650 = vrot.lane.b32.xlu1 %v641_v13, %s1272_s5  ;;  %648 = vrot.lane.b32.xlu0 %v640_v15, %s1272_s5 }
  0x9f   : > { %654 = vrot.lane.b32.xlu1 %v643_v17, %s1272_s5  ;;  %652 = vrot.lane.b32.xlu0 %v642_v18, %s1272_s5  ;;  %v271_v17 = vmul.f32 %v269_v0, %v1376_v14  ;;  %v270_v18 = vmul.f32 %v269_v0, %v1379_v16 }
  0xa3   : > { %676 = vrot.lane.b32.xlu1 %v667_v22, %s1273_s7  ;;  %674 = vrot.lane.b32.xlu0 %v666_v23, %s1273_s7  ;;  %v732_v22 = vmul.f32 %v731_v10, %v1379_v16 }
  0xa7   : > { %680 = vrot.lane.b32.xlu1 %v669_v24, %s1273_s7  ;;  %678 = vrot.lane.b32.xlu0 %v668_v25, %s1273_s7  ;;  %v273_v25 = vmul.f32 %v269_v0, %v1386_v19 }
  0xab   : > { %861 = vrot.lane.b32.xlu1 %v853_v29, %s1272_s5  ;;  %714 = vrot.lane.b32.xlu0 %v706_v31, %s1272_s5  ;;  %v335_v31 = vstv %s1144_s28 }
  0xad   : > { %v227_v37 = vpop.permute.xlu1 %226  ;;  %v223_v38 = vpop.permute.xlu0 %222 }
  0xae   : > { %v234_v7 = vadd.f32 %v223_v38, %v204_v59  ;;  %v236_v23 = vadd.f32 %v227_v37, %v206_v63  ;;  %v734_v37 = vmul.f32 %v731_v10, %v1389_v20 }
  0xaf   : > { %865 = vrot.lane.b32.xlu1 %v855_v32, %s1272_s5  ;;  %863 = vrot.lane.b32.xlu0 %v854_v35, %s1272_s5 }
  0xb1   : > { %v229_v41 = vpop.permute.xlu1 %228  ;;  %v225_v42 = vpop.permute.xlu0 %224 }
  0xb2   : > { %v235_v9 = vadd.f32 %v225_v42, %v205_v60  ;;  %v237_v24 = vadd.f32 %v229_v41, %v207_v8  ;;  %v944_v42 = vstv %s1180_s29  ;;  %v397_v8 = vstv %s396_s4 }
  0xb3   : > { %887 = vrot.lane.b32.xlu1 %v879_v39, %s1273_s7  ;;  %867 = vrot.lane.b32.xlu0 %v856_v40, %s1272_s5  ;;  %v735_v39 = vmul.f32 %v731_v10, %v1386_v19 }
  0xb5   : > { %v251_v45 = vpop.permute.xlu1 %250  ;;  %v249_v46 = vpop.permute.xlu0 %248 }
  0xb6   : > { %v261_v13 = vadd.f32 %v251_v45, %v235_v9  ;;  %v260_v15 = vadd.f32 %v249_v46, %v234_v7  ;;  %v336_v45 = vmul.f32 %v335_v31, %v1407_v30  ;;  %v771_v7 = vstv %s1168_s30 }
  0xb7   : > { %891 = vrot.lane.b32.xlu1 %v881_v43, %s1273_s7  ;;  %889 = vrot.lane.b32.xlu0 %v880_v44, %s1273_s7  ;;  %v337_v43 = vmul.f32 %v335_v31, %v1404_v28 }
  0xb8   : > { %v275_v36 = vadd.f32 %v271_v17, %v261_v13  ;;  %v274_v38 = vadd.f32 %v270_v18, %v260_v15  ;;  %v773_v17 = vmul.f32 %v771_v7, %v1404_v28  ;;  %v772_v18 = vmul.f32 %v771_v7, %v1407_v30 }
  0xb9   : > { %v255_v49 = vpop.permute.xlu1 %254  ;;  %v253_v50 = vpop.permute.xlu0 %252 }
  0xba   : > { %v263_v32 = vadd.f32 %v255_v49, %v237_v24  ;;  %v262_v35 = vadd.f32 %v253_v50, %v236_v23 }
  0xbb   : > { %716 = vrot.lane.b32.xlu1 %v707_v47, %s1272_s5  ;;  %893 = vrot.lane.b32.xlu0 %v882_v48, %s1273_s7 }
  0xbc   : > { %v277_v47 = vadd.f32 %v273_v25, %v263_v32  ;;  %v276_v48 = vadd.f32 %v272_v26, %v262_v35  ;;  %v775_v35 = vmul.f32 %v771_v7, %v1414_v33 }
  0xbd   : > { %v291_v55 = vpop.permute.xlu1 %290  ;;  %v289_v56 = vpop.permute.xlu0 %288 }
  0xbe   : > { %v301_v40 = vadd.f32 %v291_v55, %v275_v36  ;;  %v300_v41 = vadd.f32 %v289_v56, %v274_v38  ;;  %v339_v55 = vmul.f32 %v335_v31, %v1414_v33  ;;  %v774_v36 = vmul.f32 %v771_v7, %v1417_v34 }
  0xbf   : > { %720 = vrot.lane.b32.xlu1 %v709_v51, %s1272_s5  ;;  %718 = vrot.lane.b32.xlu0 %v708_v52, %s1272_s5  ;;  %v946_v51 = vmul.f32 %v944_v42, %v1376_v14  ;;  %v945_v52 = vmul.f32 %v944_v42, %v1379_v16 }
  0xc1   : > { %v295_v61 = vpop.permute.xlu1 %294  ;;  %v293_v62 = vpop.permute.xlu0 %292 }
  0xc2   : > { %v303_v53 = vadd.f32 %v295_v61, %v277_v47  ;;  %v302_v54 = vadd.f32 %v293_v62, %v276_v48  ;;  %v947_v61 = vmul.f32 %v944_v42, %v1389_v20 }
  0xc3   : > { %929 = vrot.lane.b32.xlu1 %v920_v57, %s1272_s5  ;;  %927 = vrot.lane.b32.xlu0 %v919_v58, %s1272_s5  ;;  %v338_v57 = vmul.f32 %v335_v31, %v1417_v34 }
  0xc5   : > { %v317_v11 = vpop.permute.xlu1 %316  ;;  %v315_v12 = vpop.permute.xlu0 %314 }
  0xc6   : > { %v327_v49 = vadd.f32 %v317_v11, %v301_v40  ;;  %v326_v50 = vadd.f32 %v315_v12, %v300_v41 }
  0xc7   : > { %933 = vrot.lane.b32.xlu1 %v922_v4, %s1272_s5  ;;  %931 = vrot.lane.b32.xlu0 %v921_v5, %s1272_s5  ;;  %v948_v4 = vmul.f32 %v944_v42, %v1386_v19 }
  0xc8   : > { %v341_v63 = vadd.f32 %v337_v43, %v327_v49  ;;  %v340_v0 = vadd.f32 %v336_v45, %v326_v50  ;;  %v797_v50 = vstv %s1169_s13 }
  0xc9   : > { %v321_v27 = vpop.permute.xlu1 %320  ;;  %v319_v29 = vpop.permute.xlu0 %318 }
  0xca   : > { %v329_v59 = vadd.f32 %v321_v27, %v303_v53  ;;  %v328_v60 = vadd.f32 %v319_v29, %v302_v54  ;;  %v799_v53 = vmul.f32 %v797_v50, %v1404_v28  ;;  %v798_v54 = vmul.f32 %v797_v50, %v1407_v30 }
  0xcb   : > { %742 = vrot.lane.b32.xlu1 %v733_v21, %s1273_s7  ;;  %740 = vrot.lane.b32.xlu0 %v732_v22, %s1273_s7 }
  0xcc   : > { %v343_v11 = vadd.f32 %v339_v55, %v329_v59  ;;  %v342_v12 = vadd.f32 %v338_v57, %v328_v60  ;;  %v801_v57 = vmul.f32 %v797_v50, %v1414_v33  ;;  %v1010_v59 = vstv %s1183_s14 }
  0xcd   : > { %v357_v44 = vpop.permute.xlu1 %356  ;;  %v355_v46 = vpop.permute.xlu0 %354  ;;  %v416_v60 = vstv %s1147_s15 }
  0xce   : > { %v367_v62 = vadd.f32 %v357_v44, %v341_v63  ;;  %v366_v5 = vadd.f32 %v355_v46, %v340_v0 }
  0xcf   : > { %746 = vrot.lane.b32.xlu1 %v735_v39, %s1273_s7  ;;  %744 = vrot.lane.b32.xlu0 %v734_v37, %s1273_s7  ;;  %v984_v37 = vstv %s1555_s6 }
  0xd0   : > { %v986_v44 = vmul.f32 %v984_v37, %v1404_v28  ;;  %v985_v45 = vmul.f32 %v984_v37, %v1407_v30  ;;  %v988_v48 = vmul.f32 %v984_v37, %v1414_v33  ;;  %v987_v49 = vmul.f32 %v984_v37, %v1417_v34 }
  0xd1   : > { %v361_v56 = vpop.permute.xlu1 %360  ;;  %v359_v58 = vpop.permute.xlu0 %358 }
  0xd2   : > { %v369_v21 = vadd.f32 %v361_v56, %v343_v11  ;;  %v368_v22 = vadd.f32 %v359_v58, %v342_v12  ;;  %v800_v58 = vmul.f32 %v797_v50, %v1417_v34  ;;  %v1013_v11 = vmul.f32 %v1010_v59, %v1417_v34 }
  0xd3   : > { %955 = vrot.lane.b32.xlu1 %v946_v51, %s1273_s7  ;;  %953 = vrot.lane.b32.xlu0 %v945_v52, %s1273_s7 }
  0xd5   : > { %v383_v9 = vpop.permute.xlu1 %382  ;;  %v381_v10 = vpop.permute.xlu0 %380 }
  0xd6   : > { %v393_v13 = vadd.f32 %v383_v9, %v367_v62  ;;  %v392_v15 = vadd.f32 %v381_v10, %v366_v5  ;;  %v418_v62 = vmul.f32 %v416_v60, %v1361_v6  ;;  %v417_v5 = vmul.f32 %v416_v60, %v1353_v2 }
  0xd7   : > { %959 = vrot.lane.b32.xlu1 %v948_v4, %s1273_s7  ;;  %957 = vrot.lane.b32.xlu0 %v947_v61, %s1273_s7  ;;  %v1012_v4 = vmul.f32 %v1010_v59, %v1404_v28  ;;  %v1011_v61 = vmul.f32 %v1010_v59, %v1407_v30  ;;  %v482_v9 = vstv %s1150_s16  ;;  %v1014_v10 = vmul.f32 %v1010_v59, %v1414_v33 }
  0xd8   : > { %v399_v23 = vadd.f32 %v397_v8, %v393_v13  ;;  %v398_v24 = vadd.f32 %v397_v8, %v392_v15  ;;  %v420_v15 = vmul.f32 %v416_v60, %v1356_v3 }
  0xd9   : > { %v387_v25 = vpop.permute.xlu1 %386  ;;  %v385_v26 = vpop.permute.xlu0 %384 }
  0xda   : > { %v403_v27 = vmax.f32 %v399_v23, 0.0  ;;  %v402_v29 = vmax.f32 %v398_v24, 0.0  ;;  %v395_v31 = vadd.f32 %v387_v25, %v369_v21  ;;  %v394_v32 = vadd.f32 %v385_v26, %v368_v22 }
  0xdb   : > { %782 = vrot.lane.b32.xlu1 %v773_v17, %s1272_s5  ;;  %780 = vrot.lane.b32.xlu0 %v772_v18, %s1272_s5  ;;  %v419_v17 = vmul.f32 %v416_v60, %v1350_v1  ;;  %v484_v24 = vmul.f32 %v482_v9, %v1376_v14  ;;  %v483_v25 = vmul.f32 %v482_v9, %v1379_v16 }
  0xdc   : > { %408 = vst.msk [vmem:[%s1565_s11 + $0x8] sm:$0xff] %vm406_vm0, %v403_v27  ;;  %407 = vst.msk [vmem:[%s1565_s11] sm:$0xff] %vm406_vm0, %v402_v29  ;;  %v401_v38 = vadd.f32 %v397_v8, %v395_v31  ;;  %v400_v39 = vadd.f32 %v397_v8, %v394_v32  ;;  %v486_v29 = vmul.f32 %v482_v9, %v1386_v19 }
  0xdd   : > { %v438_v40 = vpop.permute.xlu1 %437  ;;  %v436_v41 = vpop.permute.xlu0 %435  ;;  %v485_v31 = vmul.f32 %v482_v9, %v1389_v20 }
  0xde   : > { %v405_v42 = vmax.f32 %v401_v38, 0.0  ;;  %v404_v43 = vmax.f32 %v400_v39, 0.0  ;;  %v448_v12 = vadd.f32 %v438_v40, %v418_v62  ;;  %v447_v13 = vadd.f32 %v436_v41, %v417_v5 }
  0xdf   : > { %786 = vrot.lane.b32.xlu1 %v775_v35, %s1272_s5  ;;  %784 = vrot.lane.b32.xlu0 %v774_v36, %s1272_s5 }
  0xe0   : > { %410 = vst.msk [vmem:[%s1565_s11 + $0x18] sm:$0xff] %vm406_vm0, %v405_v42  ;;  %409 = vst.msk [vmem:[%s1565_s11 + $0x10] sm:$0xff] %vm406_vm0, %v404_v43 }
  0xe1   : > { %v442_v46 = vpop.permute.xlu1 %441  ;;  %v440_v47 = vpop.permute.xlu0 %439 }
  0xe2   : > { %v450_v26 = vadd.f32 %v442_v46, %v420_v15  ;;  %v449_v27 = vadd.f32 %v440_v47, %v419_v17 }
  0xe3   : > { %995 = vrot.lane.b32.xlu1 %v986_v44, %s1272_s5  ;;  %993 = vrot.lane.b32.xlu0 %v985_v45, %s1272_s5 }
  0xe5   : > { %v464_v51 = vpop.permute.xlu1 %463  ;;  %v462_v52 = vpop.permute.xlu0 %461 }
  0xe6   : > { %v474_v22 = vadd.f32 %v464_v51, %v448_v12  ;;  %v473_v23 = vadd.f32 %v462_v52, %v447_v13 }
  0xe7   : > { %999 = vrot.lane.b32.xlu1 %v988_v48, %s1272_s5  ;;  %997 = vrot.lane.b32.xlu0 %v987_v49, %s1272_s5  ;;  %s1153_s5 = sld [smem:[#allocation2 + $0xf]] }
  0xe8   : > { %v488_v37 = vadd.f32 %v484_v24, %v474_v22  ;;  %v487_v40 = vadd.f32 %v483_v25, %v473_v23 }
  0xe9   : > { %v468_v55 = vpop.permute.xlu1 %467  ;;  %v466_v56 = vpop.permute.xlu0 %465 }
  0xea   : > { %v476_v38 = vadd.f32 %v468_v55, %v450_v26  ;;  %v475_v39 = vadd.f32 %v466_v56, %v449_v27 }
  0xeb   : > { %808 = vrot.lane.b32.xlu1 %v799_v53, %s1273_s7  ;;  %806 = vrot.lane.b32.xlu0 %v798_v54, %s1273_s7 }
  0xec   : > { %v490_v47 = vadd.f32 %v486_v29, %v476_v38  ;;  %v489_v48 = vadd.f32 %v485_v31, %v475_v39 }
  0xed   : > { %v504_v63 = vpop.permute.xlu1 %503  ;;  %v502_v0 = vpop.permute.xlu0 %501  ;;  %v548_v36 = vstv %s1153_s5 }
  0xee   : > { %v514_v41 = vadd.f32 %v504_v63, %v488_v37  ;;  %v513_v42 = vadd.f32 %v502_v0, %v487_v40  ;;  %v550_v43 = vmul.f32 %v548_v36, %v1404_v28  ;;  %v549_v45 = vmul.f32 %v548_v36, %v1407_v30 }
  0xef   : > { %812 = vrot.lane.b32.xlu1 %v801_v57, %s1273_s7  ;;  %810 = vrot.lane.b32.xlu0 %v800_v58, %s1273_s7  ;;  %v552_v53 = vmul.f32 %v548_v36, %v1414_v33  ;;  %v551_v55 = vmul.f32 %v548_v36, %v1417_v34 }
  0xf1   : > { %v508_v7 = vpop.permute.xlu1 %507  ;;  %v506_v8 = vpop.permute.xlu0 %505 }
  0xf2   : > { %v516_v51 = vadd.f32 %v508_v7, %v490_v47  ;;  %v515_v52 = vadd.f32 %v506_v8, %v489_v48 }
  0xf3   : > { %1021 = vrot.lane.b32.xlu1 %v1012_v4, %s1273_s7  ;;  %1019 = vrot.lane.b32.xlu0 %v1011_v61, %s1273_s7 }
  0xf5   : > { %v530_v18 = vpop.permute.xlu1 %529  ;;  %v528_v21 = vpop.permute.xlu0 %527 }
  0xf6   : > { %v540_v49 = vadd.f32 %v530_v18, %v514_v41  ;;  %v539_v50 = vadd.f32 %v528_v21, %v513_v42 }
  0xf7   : > { %1025 = vrot.lane.b32.xlu1 %v1014_v10, %s1273_s7  ;;  %1023 = vrot.lane.b32.xlu0 %v1013_v11, %s1273_s7  ;;  %s1156_s7 = sld [smem:[#allocation4 + $0x1]] }
  0xf8   : > { %v554_v59 = vadd.f32 %v550_v43, %v540_v49  ;;  %v553_v60 = vadd.f32 %v549_v45, %v539_v50 }
  0xf9   : > { %v534_v32 = vpop.permute.xlu1 %533  ;;  %v532_v35 = vpop.permute.xlu0 %531 }
  0xfa   : > { %v542_v57 = vadd.f32 %v534_v32, %v516_v51  ;;  %v541_v58 = vadd.f32 %v532_v35, %v515_v52 }
  0xfc   : > { %v556_v5 = vadd.f32 %v552_v53, %v542_v57  ;;  %v555_v7 = vadd.f32 %v551_v55, %v541_v58 }
  0xfd   : > { %v570_v44 = vpop.permute.xlu1 %569  ;;  %v568_v46 = vpop.permute.xlu0 %567  ;;  %v610_v4 = vstv %s1156_s7 }
  0xfe   : > { %v580_v63 = vadd.f32 %v570_v44, %v554_v59  ;;  %v579_v0 = vadd.f32 %v568_v46, %v553_v60  ;;  %v629_v60 = vstv %s1161_s17 }
 0x101   : > { %v574_v54 = vpop.permute.xlu1 %573  ;;  %v572_v56 = vpop.permute.xlu0 %571 }
 0x102   : > { %v582_v10 = vadd.f32 %v574_v54, %v556_v5  ;;  %v581_v11 = vadd.f32 %v572_v56, %v555_v7  ;;  %v633_v7 = vmul.f32 %v629_v60, %v1356_v3 }
 0x105   : > { %v596_v61 = vpop.permute.xlu1 %595  ;;  %v594_v62 = vpop.permute.xlu0 %593 }
 0x106   : > { %v606_v8 = vadd.f32 %v596_v61, %v580_v63  ;;  %v605_v9 = vadd.f32 %v594_v62, %v579_v0  ;;  %v630_v61 = vmul.f32 %v629_v60, %v1353_v2 }
 0x108   : > { %v612_v12 = vadd.f32 %v610_v4, %v606_v8  ;;  %v611_v13 = vadd.f32 %v610_v4, %v605_v9  ;;  %v695_v8 = vstv %s1164_s18 }
 0x109   : > { %v600_v15 = vpop.permute.xlu1 %599  ;;  %v598_v17 = vpop.permute.xlu0 %597 }
 0x10a   : > { %v616_v18 = vmax.f32 %v612_v12, 0.0  ;;  %v615_v21 = vmax.f32 %v611_v13, 0.0  ;;  %v608_v22 = vadd.f32 %v600_v15, %v582_v10  ;;  %v607_v23 = vadd.f32 %v598_v17, %v581_v11 }
 0x10b   : > { %v632_v11 = vmul.f32 %v629_v60, %v1350_v1  ;;  %v842_v12 = vstv %s1175_s19 }
 0x10c   : > { %1158 = vst.msk [vmem:[%s1565_s11 + $0x28] sm:$0xff] %vm406_vm0, %v616_v18  ;;  %1157 = vst.msk [vmem:[%s1565_s11 + $0x20] sm:$0xff] %vm406_vm0, %v615_v21  ;;  %v614_v24 = vadd.f32 %v610_v4, %v608_v22  ;;  %v613_v25 = vadd.f32 %v610_v4, %v607_v23  ;;  %v631_v4 = vmul.f32 %v629_v60, %v1361_v6 }
 0x10d   : > { %v651_v26 = vpop.permute.xlu1 %650  ;;  %v649_v27 = vpop.permute.xlu0 %648  ;;  %v696_v21 = vmul.f32 %v695_v8, %v1379_v16  ;;  %v697_v22 = vmul.f32 %v695_v8, %v1376_v14  ;;  %v843_v23 = vmul.f32 %v842_v12, %v1353_v2 }
 0x10e   : > { %v618_v29 = vmax.f32 %v614_v24, 0.0  ;;  %v617_v31 = vmax.f32 %v613_v25, 0.0  ;;  %v661_v9 = vadd.f32 %v651_v26, %v631_v4  ;;  %v660_v10 = vadd.f32 %v649_v27, %v630_v61 }
 0x10f   : > { %v844_v24 = vmul.f32 %v842_v12, %v1361_v6  ;;  %v845_v26 = vmul.f32 %v842_v12, %v1350_v1  ;;  %v699_v27 = vmul.f32 %v695_v8, %v1386_v19 }
 0x110   : > { %1160 = vst.msk [vmem:[%s1565_s11 + $0x38] sm:$0xff] %vm406_vm0, %v618_v29  ;;  %1159 = vst.msk [vmem:[%s1565_s11 + $0x30] sm:$0xff] %vm406_vm0, %v617_v31  ;;  %v908_v31 = vstv %s1178_s20 }
 0x111   : > { %v655_v32 = vpop.permute.xlu1 %654  ;;  %v653_v35 = vpop.permute.xlu0 %652 }
 0x112   : > { %v663_v25 = vadd.f32 %v655_v32, %v633_v7  ;;  %v662_v29 = vadd.f32 %v653_v35, %v632_v11  ;;  %v846_v7 = vmul.f32 %v842_v12, %v1356_v3 }
 0x115   : > { %v677_v36 = vpop.permute.xlu1 %676  ;;  %v675_v38 = vpop.permute.xlu0 %674 }
 0x116   : > { %v687_v17 = vadd.f32 %v677_v36, %v661_v9  ;;  %v686_v18 = vadd.f32 %v675_v38, %v660_v10  ;;  %v698_v36 = vmul.f32 %v695_v8, %v1389_v20  ;;  %v761_v38 = vstv %s1167_s21 }
 0x117   : > { %v909_v10 = vmul.f32 %v908_v31, %v1379_v16  ;;  %v910_v8 = vmul.f32 %v908_v31, %v1376_v14  ;;  %v762_v3 = vmul.f32 %v761_v38, %v1407_v30 }
 0x118   : > { %v700_v9 = vadd.f32 %v696_v21, %v686_v18  ;;  %v701_v6 = vadd.f32 %v697_v22, %v687_v17  ;;  %v912_v18 = vmul.f32 %v908_v31, %v1386_v19  ;;  %v764_v22 = vmul.f32 %v761_v38, %v1417_v34 }
 0x119   : > { %v681_v39 = vpop.permute.xlu1 %680  ;;  %v679_v37 = vpop.permute.xlu0 %678 }
 0x11a   : > { %v689_v61 = vadd.f32 %v681_v39, %v663_v25  ;;  %v688_v2 = vadd.f32 %v679_v37, %v662_v29 }
 0x11c   : > { %v703_v12 = vadd.f32 %v699_v27, %v689_v61 }
 0x11d   : > { %v862_v40 = vpop.permute.xlu1 %861  ;;  %v1626_v41 = vpop.permute.xlu0 %714 }
 0x11e   : > { %v873_v32 = vadd.f32 %v862_v40, %v843_v23  ;;  %v726_v1 = vadd.f32 %v1626_v41, %v700_v9  ;;  %v763_v40 = vmul.f32 %v761_v38, %v1404_v28  ;;  %v702_v41 = vadd.f32 %v698_v36, %v688_v2 }
 0x11f   : > { %v974_v23 = vstv %s1672_s22 }
 0x120   : > { %v976_v27 = vmul.f32 %v974_v23, %v1404_v28 }
 0x121   : > { %v1628_v42 = vpop.permute.xlu1 %865  ;;  %v864_v43 = vpop.permute.xlu0 %863 }
 0x122   : > { %v874_v35 = vadd.f32 %v864_v43, %v844_v24  ;;  %v875_v14 = vadd.f32 %v1628_v42, %v845_v26 }
 0x125   : > { %v1630_v44 = vpop.permute.xlu1 %887  ;;  %v1632_v45 = vpop.permute.xlu0 %867 }
 0x126   : > { %v899_v39 = vadd.f32 %v1630_v44, %v873_v32  ;;  %v765_v44 = vmul.f32 %v761_v38, %v1414_v33  ;;  %v823_v38 = vstv %s1686_s23 }
 0x128   : > { %v913_v42 = vadd.f32 %v909_v10, %v899_v39 }
 0x129   : > { %v1634_v46 = vpop.permute.xlu1 %891  ;;  %v1636_v47 = vpop.permute.xlu0 %889 }
 0x12a   : > { %v900_v37 = vadd.f32 %v1636_v47, %v874_v35  ;;  %v901_v24 = vadd.f32 %v1634_v46, %v875_v14 }
 0x12d   : > { %v717_v48 = vpop.permute.xlu1 %716  ;;  %v1638_v49 = vpop.permute.xlu0 %893 }
 0x12e   : > { %v727_v11 = vadd.f32 %v717_v48, %v701_v6 }
 0x131   : > { %v1640_v50 = vpop.permute.xlu1 %720  ;;  %v1642_v51 = vpop.permute.xlu0 %718 }
 0x132   : > { %v729_v47 = vadd.f32 %v1640_v50, %v703_v12  ;;  %v728_v21 = vadd.f32 %v1642_v51, %v702_v41 }
 0x135   : > { %v1644_v52 = vpop.permute.xlu1 %929  ;;  %v1646_v53 = vpop.permute.xlu0 %927 }
 0x136   : > { %v939_v26 = vadd.f32 %v1646_v53, %v913_v42 }
 0x139   : > { %v1648_v54 = vpop.permute.xlu1 %933  ;;  %v1650_v55 = vpop.permute.xlu0 %931 }
 0x13d   : > { %v743_v56 = vpop.permute.xlu1 %742  ;;  %v741_v57 = vpop.permute.xlu0 %740 }
 0x13e   : > { %v753_v48 = vadd.f32 %v743_v56, %v727_v11  ;;  %v752_v17 = vadd.f32 %v741_v57, %v726_v1  ;;  %v914_v57 = vadd.f32 %v910_v8, %v900_v37 }
 0x140   : > { %v766_v50 = vadd.f32 %v762_v3, %v752_v17  ;;  %v940_v51 = vadd.f32 %v1644_v52, %v914_v57 }
 0x141   : > { %v1652_v58 = vpop.permute.xlu1 %746  ;;  %v1654_v59 = vpop.permute.xlu0 %744 }
 0x142   : > { %v755_v19 = vadd.f32 %v1652_v58, %v729_v47  ;;  %v754_v29 = vadd.f32 %v1654_v59, %v728_v21 }
 0x144   : > { %v769_v52 = vadd.f32 %v765_v44, %v755_v19  ;;  %v768_v32 = vadd.f32 %v764_v22, %v754_v29 }
 0x145   : > { %v1656_v63 = vpop.permute.xlu1 %955  ;;  %v1658_v0 = vpop.permute.xlu0 %953 }
 0x146   : > { %v966_v9 = vadd.f32 %v1656_v63, %v940_v51  ;;  %v965_v58 = vadd.f32 %v1658_v0, %v939_v26 }
 0x148   : > { %v980_v8 = vadd.f32 %v976_v27, %v966_v9 }
 0x149   : > { %v1662_v62 = vpop.permute.xlu1 %959  ;;  %v1664_v5 = vpop.permute.xlu0 %957 }
 0x14a   : > { %1754 = vst [vmem:[#allocation8_spill] sm:$0xff] %v1664_v5  ;;  %v911_v5 = vmul.f32 %v908_v31, %v1389_v20  ;;  %v876_v20 = vadd.f32 %v1632_v45, %v846_v7  ;;  %v767_v31 = vadd.f32 %v763_v40, %v753_v48  ;;  %v1036_v48 = vstv %s1711_s24 }
 0x14c   : > { %v902_v56 = vadd.f32 %v1638_v49, %v876_v20  ;;  %v975_v49 = vmul.f32 %v974_v23, %v1407_v30  ;;  %v915_v2 = vadd.f32 %v911_v5, %v901_v24  ;;  %v978_v30 = vmul.f32 %v974_v23, %v1414_v33 }
 0x14d   : > { %v783_v13 = vpop.permute.xlu1 %782  ;;  %v781_v15 = vpop.permute.xlu0 %780  ;;  %v977_v5 = vmul.f32 %v974_v23, %v1417_v34 }
 0x14e   : > { %v793_v46 = vadd.f32 %v783_v13, %v767_v31  ;;  %v792_v36 = vadd.f32 %v781_v15, %v766_v50  ;;  %v916_v61 = vadd.f32 %v912_v18, %v902_v56  ;;  %v941_v13 = vadd.f32 %v1650_v55, %v915_v2 }
 0x150   : > { %v942_v28 = vadd.f32 %v1648_v54, %v916_v61  ;;  %v979_v54 = vadd.f32 %v975_v49, %v965_v58 }
 0x151   : > { %v1677_v60 = vpop.permute.xlu1 %786  ;;  %v1679_v4 = vpop.permute.xlu0 %784  ;;  %v1755_v1 = vld [vmem:[#allocation8_spill] sm:$0xff] }
 0x152   : > { %v795_v63 = vadd.f32 %v1677_v60, %v769_v52  ;;  %v794_v0 = vadd.f32 %v1679_v4, %v768_v32  ;;  %v968_v10 = vadd.f32 %v1662_v62, %v942_v28  ;;  %v967_v11 = vadd.f32 %v1755_v1, %v941_v13 }
 0x154   : > { %v982_v12 = vadd.f32 %v978_v30, %v968_v10  ;;  %v981_v41 = vadd.f32 %v977_v5, %v967_v11 }
 0x155   : > { %v996_v43 = vpop.permute.xlu1 %995  ;;  %v994_v16 = vpop.permute.xlu0 %993 }
 0x156   : > { %v1006_v60 = vadd.f32 %v996_v43, %v980_v8  ;;  %v1005_v3 = vadd.f32 %v994_v16, %v979_v54 }
 0x159   : > { %v1000_v25 = vpop.permute.xlu1 %999  ;;  %v998_v45 = vpop.permute.xlu0 %997 }
 0x15a   : > { %v1008_v16 = vadd.f32 %v1000_v25, %v982_v12  ;;  %v1007_v47 = vadd.f32 %v998_v45, %v981_v41 }
 0x15d   : > { %v809_v59 = vpop.permute.xlu1 %808  ;;  %v807_v6 = vpop.permute.xlu0 %806 }
 0x15e   : > { %v819_v53 = vadd.f32 %v809_v59, %v793_v46  ;;  %v818_v35 = vadd.f32 %v807_v6, %v792_v36 }
 0x160   : > { %v825_v15 = vadd.f32 %v823_v38, %v819_v53  ;;  %v824_v7 = vadd.f32 %v823_v38, %v818_v35 }
 0x161   : > { %v813_v55 = vpop.permute.xlu1 %812  ;;  %v811_v39 = vpop.permute.xlu0 %810 }
 0x162   : > { %v829_v33 = vmax.f32 %v825_v15, 0.0  ;;  %v828_v37 = vmax.f32 %v824_v7, 0.0  ;;  %v821_v34 = vadd.f32 %v813_v55, %v795_v63  ;;  %v820_v40 = vadd.f32 %v811_v39, %v794_v0 }
 0x164   : > { %1172 = vst.msk [vmem:[%s1565_s11 + $0x48] sm:$0xff] %vm406_vm0, %v829_v33  ;;  %1171 = vst.msk [vmem:[%s1565_s11 + $0x40] sm:$0xff] %vm406_vm0, %v828_v37  ;;  %v827_v62 = vadd.f32 %v823_v38, %v821_v34  ;;  %v826_v4 = vadd.f32 %v823_v38, %v820_v40 }
 0x165   : > { %v1022_v17 = vpop.permute.xlu1 %1021  ;;  %v1020_v14 = vpop.permute.xlu0 %1019 }
 0x166   : > { %v831_v20 = vmax.f32 %v827_v62, 0.0  ;;  %v830_v18 = vmax.f32 %v826_v4, 0.0  ;;  %v1032_v44 = vadd.f32 %v1022_v17, %v1006_v60  ;;  %v1031_v43 = vadd.f32 %v1020_v14, %v1005_v3 }
 0x168   : > { %1174 = vst.msk [vmem:[%s1565_s11 + $0x58] sm:$0xff] %vm406_vm0, %v831_v20  ;;  %1173 = vst.msk [vmem:[%s1565_s11 + $0x50] sm:$0xff] %vm406_vm0, %v830_v18  ;;  %v1038_v21 = vadd.f32 %v1036_v48, %v1032_v44  ;;  %v1037_v22 = vadd.f32 %v1036_v48, %v1031_v43 }
 0x169   : > { %v1026_v23 = vpop.permute.xlu1 %1025  ;;  %v1024_v24 = vpop.permute.xlu0 %1023 }
 0x16a   : > { %v1042_v56 = vmax.f32 %v1038_v21, 0.0  ;;  %v1041_v57 = vmax.f32 %v1037_v22, 0.0  ;;  %v1034_v42 = vadd.f32 %v1026_v23, %v1008_v16  ;;  %v1033_v19 = vadd.f32 %v1024_v24, %v1007_v47 }
 0x16c   : > { %1186 = vst.msk [vmem:[%s1565_s11 + $0x68] sm:$0xff] %vm406_vm0, %v1042_v56  ;;  %1185 = vst.msk [vmem:[%s1565_s11 + $0x60] sm:$0xff] %vm406_vm0, %v1041_v57  ;;  %v1040_v25 = vadd.f32 %v1036_v48, %v1034_v42  ;;  %v1039_v45 = vadd.f32 %v1036_v48, %v1033_v19 }
 0x16e   : > { %v1044_v29 = vmax.f32 %v1040_v25, 0.0  ;;  %v1043_v31 = vmax.f32 %v1039_v45, 0.0 }
 0x170   : > { %1188 = vst.msk [vmem:[%s1565_s11 + $0x78] sm:$0xff] %vm406_vm0, %v1044_v29  ;;  %1187 = vst.msk [vmem:[%s1565_s11 + $0x70] sm:$0xff] %vm406_vm0, %v1043_v31 }
 0x171 PF: > { %s15_s12 = sadd.s32 1, %s1268_s12  }
 0x172   : > { %p12_p5 = scmp.ge.s32.totalorder %s15_s12, 4  }
 0x174   :  { %14 = sbr.rel (!%p12_p5) target bundleno = 2 (0x2), region = 74 }
 0x17b   :  { %1071 = vsyncpa [#allocation3], 1 }
 0x17c   :  { %1073 = vsyncpa [#allocation3 + $0x1], 1 }
 0x17d   :  { %1074 = vsyncpa [#allocation5], 1 }

</bundles_post_ra>
